<compile_context>
chip_gen: v6e
topology: v6e:2x2x1
jax: 0.10.0
libtpu: 0.0.40
codegen_flags: <defaults>
</compile_context>

<pallas_src>
import re
from functools import partial

import jax
import jax.numpy as jnp
from jax import lax
from jax.experimental import pallas as pl
from jax.experimental.pallas import tpu as pltpu


IN_FEATURES = 8   # stand-in for len(features) (== 0 in the source, degenerate)
H1, H2, H3, H4, H5 = 32, 16, 16, 8, 1
DEFAULT_TILE_B = 8192     # batch tile on lanes (multiple of 256)
_LANE_MULT = 256          # batch padding granularity (safe for f32 and bf16)


def _tpu_generation() -> int:
    """Extract the TPU generation number from device_kind ('TPU v6e', 'TPU7x', ...)."""
    try:
        kind = jax.devices()[0].device_kind
    except Exception:
        return 0
    m = re.search(r"(\d+)", kind)
    return int(m.group(1)) if m else 0


_GEN = _tpu_generation()
# bf16 VPU/EUP exists on v6e and later; v5e and older stay f32.
COMPUTE_DTYPE = jnp.bfloat16 if _GEN >= 6 else jnp.float32
OUT_DTYPE = COMPUTE_DTYPE   # bf16 output on v6e/v7x halves write traffic


def _round_up(x: int, m: int) -> int:
    return ((x + m - 1) // m) * m


def _pick_tile_b(batch: int, gen: int, max_tile: int = DEFAULT_TILE_B) -> int:
    """Pick a static batch tile: big (amortize grid overhead), lane-aligned,
    and small enough that gen>=7 chips (2 TensorCores) get >= 2 tiles."""
    bp = max(_LANE_MULT, _round_up(batch, _LANE_MULT))
    tile = min(max_tile, bp)
    if gen >= 7 and bp >= 2 * _LANE_MULT:
        half = _round_up(-(-bp // 2), _LANE_MULT)
        tile = min(tile, half)
    return tile


def _mlp_kernel(x_ref,
                w1_ref, b1_ref,
                w2_ref, b2_ref,
                w3_ref, b3_ref,
                w4_ref, b4_ref,
                w5_ref, b5_ref,
                o_ref):
    cdt = w1_ref.dtype

    # fc1 with the x transpose folded in: contract feature axes of w1 [H1, F]
    # and x [TILE_B, F] -> [H1, TILE_B] (batch already on lanes).
    acc = lax.dot_general(w1_ref[...], x_ref[...],
                          dimension_numbers=(((1,), (1,)), ((), ())),
                          preferred_element_type=jnp.float32)
    h = jnp.tanh((acc + b1_ref[...]).astype(cdt))            # [H1, TILE_B]

    # fc2..fc4: tanh(W @ h + b); dropouts are identity in eval mode.
    for w_ref, b_ref in ((w2_ref, b2_ref), (w3_ref, b3_ref), (w4_ref, b4_ref)):
        acc = jnp.dot(w_ref[...], h, preferred_element_type=jnp.float32)
        h = jnp.tanh((acc + b_ref[...]).astype(cdt))          # [out, TILE_B]

    # fc5 (out width 1): VPU broadcast-multiply + sublane reduce; skip a
    # 1-wide MXU dot entirely.
    z = jnp.sum(w5_ref[...] * h.astype(jnp.float32), axis=0, keepdims=True)
    z = z + b5_ref[...]                                        # [1, TILE_B]

    # sigmoid(z) = 0.5 * (tanh(z / 2) + 1): one EUP op instead of exp + divide.
    o_ref[...] = (0.5 * (jnp.tanh(0.5 * z) + 1.0)).astype(o_ref.dtype)


def prepare_params(params, compute_dtype=COMPUTE_DTYPE):
    """One-time conversion to the kernel layout: bf16 (or f32) weights, f32
    biases, fc5 weight pre-transposed for the VPU path."""
    w1, b1 = params["fc1"]
    w2, b2 = params["fc2"]
    w3, b3 = params["fc3"]
    w4, b4 = params["fc4"]
    w5, b5 = params["fc5"]
    return (w1.astype(compute_dtype), b1.astype(jnp.float32),
            w2.astype(compute_dtype), b2.astype(jnp.float32),
            w3.astype(compute_dtype), b3.astype(jnp.float32),
            w4.astype(compute_dtype), b4.astype(jnp.float32),
            w5.T.astype(jnp.float32),                    # [H4, 1] for VPU path
            b5.astype(jnp.float32))                      # [1, 1]


@jax.jit
def mlp_forward(x, kparams):
    """x: [B, IN_FEATURES] f32. kparams: output of prepare_params.

    Returns [B, 1] f32 (matches the PyTorch module's output shape).
    """
    B, F = x.shape
    cdt = kparams[0].dtype

    tile_b = _pick_tile_b(B, _GEN)
    n_tiles = -(-B // tile_b)
    Bp = n_tiles * tile_b

    xp = x if Bp == B else jnp.pad(x, ((0, Bp - B), (0, 0)))
    xp = xp.astype(cdt)                                   # [Bp, F], no transpose

    # x / out tiled over batch; all weights/biases resident (block index 0).
    x_spec = pl.BlockSpec((tile_b, F), lambda i: (i, 0))
    resident = lambda a: pl.BlockSpec(a.shape, lambda i: (0, 0))
    out_spec = pl.BlockSpec((H5, tile_b), lambda i: (0, i))   # lane-dense output

    out = pl.pallas_call(
        _mlp_kernel,
        out_shape=jax.ShapeDtypeStruct((H5, Bp), OUT_DTYPE),
        grid_spec=pltpu.PrefetchScalarGridSpec(
            num_scalar_prefetch=0,
            grid=(n_tiles,),
            in_specs=[x_spec] + [resident(a) for a in kparams],
            out_specs=out_spec,
        ),
        compiler_params=pltpu.CompilerParams(
            dimension_semantics=("parallel",),
            vmem_limit_bytes=32 * 1024 * 1024),
    )(xp, *kparams)

    return out[:, :B].T.astype(jnp.float32)               # [B, 1] f32


def init_params(key):
    """Deterministic parameter init (shapes match the PyTorch module, [out, in])."""
    dims = [(IN_FEATURES, H1), (H1, H2), (H2, H3), (H3, H4), (H4, H5)]
    names = ["fc1", "fc2", "fc3", "fc4", "fc5"]
    params = {}
    for name, (din, dout) in zip(names, dims):
        key, kw, kb = jax.random.split(key, 3)
        bound = 1.0 / (din ** 0.5)
        w = jax.random.uniform(kw, (dout, din), jnp.float32, -bound, bound)
        b = jax.random.uniform(kb, (dout, 1), jnp.float32, -bound, bound)
        params[name] = (w, b)
    return params


def reference_forward(x, params):
    h = x
    for name in ("fc1", "fc2", "fc3", "fc4"):
        w, b = params[name]
        h = jnp.tanh(h @ w.T + b[:, 0])
    w, b = params["fc5"]
    return jax.nn.sigmoid(h @ w.T + b[:, 0])


if __name__ == "__main__":
    key = jax.random.PRNGKey(0)
    kx, kp = jax.random.split(key)
    B = 1024
    x = jax.random.normal(kx, (B, IN_FEATURES), jnp.float32)
    params = init_params(kp)
    kparams = prepare_params(params)          # one-time cast / transpose

    out = mlp_forward(x, kparams)
    out = jax.block_until_ready(out)

    ref = reference_forward(x, params)
    assert out.shape == (B, H5), out.shape

    atol = 1e-5 if COMPUTE_DTYPE == jnp.float32 else 5e-2
    assert jnp.allclose(out, ref, atol=atol, rtol=atol), "mismatch vs reference"
    print("KERNEL_OK")
</pallas_src>

<mosaic_0001>
module attributes {stable_mosaic.version = 11 : i64} {
  func.func @_mlp_kernel(%arg0: i32, %arg1: memref<1024x8xf32, #tpu.memory_space<vmem>>, %arg2: memref<32x8xf32, #tpu.memory_space<vmem>>, %arg3: memref<32x1xf32, #tpu.memory_space<vmem>>, %arg4: memref<16x32xf32, #tpu.memory_space<vmem>>, %arg5: memref<16x1xf32, #tpu.memory_space<vmem>>, %arg6: memref<16x16xf32, #tpu.memory_space<vmem>>, %arg7: memref<16x1xf32, #tpu.memory_space<vmem>>, %arg8: memref<8x16xf32, #tpu.memory_space<vmem>>, %arg9: memref<8x1xf32, #tpu.memory_space<vmem>>, %arg10: memref<8x1xf32, #tpu.memory_space<vmem>>, %arg11: memref<1x1xf32, #tpu.memory_space<vmem>>, %arg12: memref<1x1024xf32, #tpu.memory_space<vmem>>) attributes {dimension_semantics = [#tpu.dimension_semantics<parallel>], iteration_bounds = array<i64: 1>, scalar_prefetch = 0 : i64, scratch_operands = 0 : i64, tpu.core_type = #tpu.core_type<tc>, window_params = [{transform_indices = @transform_0, window_bounds = array<i64: 1024, 8>}, {pipeline_mode = #tpu.pipeline_mode<synchronous>, transform_indices = @transform_1, window_bounds = array<i64: 32, 8>}, {pipeline_mode = #tpu.pipeline_mode<synchronous>, transform_indices = @transform_2, window_bounds = array<i64: 32, 1>}, {pipeline_mode = #tpu.pipeline_mode<synchronous>, transform_indices = @transform_3, window_bounds = array<i64: 16, 32>}, {pipeline_mode = #tpu.pipeline_mode<synchronous>, transform_indices = @transform_4, window_bounds = array<i64: 16, 1>}, {pipeline_mode = #tpu.pipeline_mode<synchronous>, transform_indices = @transform_5, window_bounds = array<i64: 16, 16>}, {pipeline_mode = #tpu.pipeline_mode<synchronous>, transform_indices = @transform_6, window_bounds = array<i64: 16, 1>}, {pipeline_mode = #tpu.pipeline_mode<synchronous>, transform_indices = @transform_7, window_bounds = array<i64: 8, 16>}, {pipeline_mode = #tpu.pipeline_mode<synchronous>, transform_indices = @transform_8, window_bounds = array<i64: 8, 1>}, {pipeline_mode = #tpu.pipeline_mode<synchronous>, transform_indices = @transform_9, window_bounds = array<i64: 8, 1>}, {pipeline_mode = #tpu.pipeline_mode<synchronous>, transform_indices = @transform_10, window_bounds = array<i64: 1, 1>}, {transform_indices = @transform_11, window_bounds = array<i64: 1, 1024>}]} {
    %c0 = arith.constant 0 : index
    %c0_0 = arith.constant 0 : index
    %0 = vector.load %arg2[%c0, %c0_0] : memref<32x8xf32, #tpu.memory_space<vmem>>, vector<32x8xf32>
    %c0_1 = arith.constant 0 : index
    %c0_2 = arith.constant 0 : index
    %1 = vector.load %arg1[%c0_1, %c0_2] : memref<1024x8xf32, #tpu.memory_space<vmem>>, vector<1024x8xf32>
    %cst = arith.constant dense<0.000000e+00> : vector<32x1024xf32>
    %2 = tpu.matmul %0, %1, %cst {dimension_numbers = #tpu.dot_dimension_numbers<[1], [1], [0], [0], [0, 0, 1, 0], [], []>} : vector<32x8xf32>, vector<1024x8xf32>, vector<32x1024xf32> -> vector<32x1024xf32>
    %c0_3 = arith.constant 0 : index
    %c0_4 = arith.constant 0 : index
    %3 = vector.load %arg3[%c0_3, %c0_4] : memref<32x1xf32, #tpu.memory_space<vmem>>, vector<32x1xf32>
    %4 = vector.broadcast %3 : vector<32x1xf32> to vector<32x1024xf32>
    %5 = arith.addf %2, %4 : vector<32x1024xf32>
    %6 = math.tanh %5 : vector<32x1024xf32>
    %c0_5 = arith.constant 0 : index
    %c0_6 = arith.constant 0 : index
    %7 = vector.load %arg4[%c0_5, %c0_6] : memref<16x32xf32, #tpu.memory_space<vmem>>, vector<16x32xf32>
    %cst_7 = arith.constant dense<0.000000e+00> : vector<16x1024xf32>
    %8 = tpu.matmul %7, %6, %cst_7 {dimension_numbers = #tpu.dot_dimension_numbers<[1], [0], [0], [1], [0, 0, 1, 1], [], []>} : vector<16x32xf32>, vector<32x1024xf32>, vector<16x1024xf32> -> vector<16x1024xf32>
    %c0_8 = arith.constant 0 : index
    %c0_9 = arith.constant 0 : index
    %9 = vector.load %arg5[%c0_8, %c0_9] : memref<16x1xf32, #tpu.memory_space<vmem>>, vector<16x1xf32>
    %10 = vector.broadcast %9 : vector<16x1xf32> to vector<16x1024xf32>
    %11 = arith.addf %8, %10 : vector<16x1024xf32>
    %12 = math.tanh %11 : vector<16x1024xf32>
    %c0_10 = arith.constant 0 : index
    %c0_11 = arith.constant 0 : index
    %13 = vector.load %arg6[%c0_10, %c0_11] : memref<16x16xf32, #tpu.memory_space<vmem>>, vector<16x16xf32>
    %cst_12 = arith.constant dense<0.000000e+00> : vector<16x1024xf32>
    %14 = tpu.matmul %13, %12, %cst_12 {dimension_numbers = #tpu.dot_dimension_numbers<[1], [0], [0], [1], [0, 0, 1, 1], [], []>} : vector<16x16xf32>, vector<16x1024xf32>, vector<16x1024xf32> -> vector<16x1024xf32>
    %c0_13 = arith.constant 0 : index
    %c0_14 = arith.constant 0 : index
    %15 = vector.load %arg7[%c0_13, %c0_14] : memref<16x1xf32, #tpu.memory_space<vmem>>, vector<16x1xf32>
    %16 = vector.broadcast %15 : vector<16x1xf32> to vector<16x1024xf32>
    %17 = arith.addf %14, %16 : vector<16x1024xf32>
    %18 = math.tanh %17 : vector<16x1024xf32>
    %c0_15 = arith.constant 0 : index
    %c0_16 = arith.constant 0 : index
    %19 = vector.load %arg8[%c0_15, %c0_16] : memref<8x16xf32, #tpu.memory_space<vmem>>, vector<8x16xf32>
    %cst_17 = arith.constant dense<0.000000e+00> : vector<8x1024xf32>
    %20 = tpu.matmul %19, %18, %cst_17 {dimension_numbers = #tpu.dot_dimension_numbers<[1], [0], [0], [1], [0, 0, 1, 1], [], []>} : vector<8x16xf32>, vector<16x1024xf32>, vector<8x1024xf32> -> vector<8x1024xf32>
    %c0_18 = arith.constant 0 : index
    %c0_19 = arith.constant 0 : index
    %21 = vector.load %arg9[%c0_18, %c0_19] : memref<8x1xf32, #tpu.memory_space<vmem>>, vector<8x1xf32>
    %22 = vector.broadcast %21 : vector<8x1xf32> to vector<8x1024xf32>
    %23 = arith.addf %20, %22 : vector<8x1024xf32>
    %24 = math.tanh %23 : vector<8x1024xf32>
    %c0_20 = arith.constant 0 : index
    %c0_21 = arith.constant 0 : index
    %25 = vector.load %arg10[%c0_20, %c0_21] : memref<8x1xf32, #tpu.memory_space<vmem>>, vector<8x1xf32>
    %26 = vector.broadcast %25 : vector<8x1xf32> to vector<8x1024xf32>
    %27 = arith.mulf %26, %24 : vector<8x1024xf32>
    %cst_22 = arith.constant dense<0.000000e+00> : vector<1024xf32>
    %28 = vector.multi_reduction <add>, %27, %cst_22 [0] : vector<8x1024xf32> to vector<1024xf32>
    %29 = vector.shape_cast %28 : vector<1024xf32> to vector<1x1024xf32>
    %c0_23 = arith.constant 0 : index
    %c0_24 = arith.constant 0 : index
    %30 = vector.load %arg11[%c0_23, %c0_24] : memref<1x1xf32, #tpu.memory_space<vmem>>, vector<1x1xf32>
    %31 = vector.broadcast %30 : vector<1x1xf32> to vector<1x1024xf32>
    %32 = arith.addf %29, %31 : vector<1x1024xf32>
    %cst_25 = arith.constant 5.000000e-01 : f32
    %33 = vector.broadcast %cst_25 : f32 to vector<1x1024xf32>
    %34 = arith.mulf %33, %32 : vector<1x1024xf32>
    %35 = math.tanh %34 : vector<1x1024xf32>
    %cst_26 = arith.constant 1.000000e+00 : f32
    %36 = vector.broadcast %cst_26 : f32 to vector<1x1024xf32>
    %37 = arith.addf %35, %36 : vector<1x1024xf32>
    %cst_27 = arith.constant 5.000000e-01 : f32
    %38 = vector.broadcast %cst_27 : f32 to vector<1x1024xf32>
    %39 = arith.mulf %38, %37 : vector<1x1024xf32>
    %c0_28 = arith.constant 0 : index
    %c0_29 = arith.constant 0 : index
    %40 = vector.load %arg12[%c0_28, %c0_29] : memref<1x1024xf32, #tpu.memory_space<vmem>>, vector<1x1024xf32>
    tpu.vector_store %arg12[%c0_28, %c0_29], %39 {strides = array<i32>} : memref<1x1024xf32, #tpu.memory_space<vmem>>, vector<1x1024xf32>,
    return
  }
  func.func @transform_0(%arg0: i32) -> (i32, i32) {
    %c0_i32 = arith.constant 0 : i32
    %c0_i32_0 = arith.constant 0 : i32
    return %arg0, %c0_i32 : i32, i32
  }
  func.func @transform_1(%arg0: i32) -> (i32, i32) {
    %c0_i32 = arith.constant 0 : i32
    %c0_i32_0 = arith.constant 0 : i32
    %c0_i32_1 = arith.constant 0 : i32
    return %c0_i32, %c0_i32_0 : i32, i32
  }
  func.func @transform_2(%arg0: i32) -> (i32, i32) {
    %c0_i32 = arith.constant 0 : i32
    %c0_i32_0 = arith.constant 0 : i32
    %c0_i32_1 = arith.constant 0 : i32
    return %c0_i32, %c0_i32_0 : i32, i32
  }
  func.func @transform_3(%arg0: i32) -> (i32, i32) {
    %c0_i32 = arith.constant 0 : i32
    %c0_i32_0 = arith.constant 0 : i32
    %c0_i32_1 = arith.constant 0 : i32
    return %c0_i32, %c0_i32_0 : i32, i32
  }
  func.func @transform_4(%arg0: i32) -> (i32, i32) {
    %c0_i32 = arith.constant 0 : i32
    %c0_i32_0 = arith.constant 0 : i32
    %c0_i32_1 = arith.constant 0 : i32
    return %c0_i32, %c0_i32_0 : i32, i32
  }
  func.func @transform_5(%arg0: i32) -> (i32, i32) {
    %c0_i32 = arith.constant 0 : i32
    %c0_i32_0 = arith.constant 0 : i32
    %c0_i32_1 = arith.constant 0 : i32
    return %c0_i32, %c0_i32_0 : i32, i32
  }
  func.func @transform_6(%arg0: i32) -> (i32, i32) {
    %c0_i32 = arith.constant 0 : i32
    %c0_i32_0 = arith.constant 0 : i32
    %c0_i32_1 = arith.constant 0 : i32
    return %c0_i32, %c0_i32_0 : i32, i32
  }
  func.func @transform_7(%arg0: i32) -> (i32, i32) {
    %c0_i32 = arith.constant 0 : i32
    %c0_i32_0 = arith.constant 0 : i32
    %c0_i32_1 = arith.constant 0 : i32
    return %c0_i32, %c0_i32_0 : i32, i32
  }
  func.func @transform_8(%arg0: i32) -> (i32, i32) {
    %c0_i32 = arith.constant 0 : i32
    %c0_i32_0 = arith.constant 0 : i32
    %c0_i32_1 = arith.constant 0 : i32
    return %c0_i32, %c0_i32_0 : i32, i32
  }
  func.func @transform_9(%arg0: i32) -> (i32, i32) {
    %c0_i32 = arith.constant 0 : i32
    %c0_i32_0 = arith.constant 0 : i32
    %c0_i32_1 = arith.constant 0 : i32
    return %c0_i32, %c0_i32_0 : i32, i32
  }
  func.func @transform_10(%arg0: i32) -> (i32, i32) {
    %c0_i32 = arith.constant 0 : i32
    %c0_i32_0 = arith.constant 0 : i32
    %c0_i32_1 = arith.constant 0 : i32
    return %c0_i32, %c0_i32_0 : i32, i32
  }
  func.func @transform_11(%arg0: i32) -> (i32, i32) {
    %c0_i32 = arith.constant 0 : i32
    %c0_i32_0 = arith.constant 0 : i32
    return %c0_i32, %arg0 : i32, i32
  }
}

</mosaic_0001>

<bundles_post_ra>
// kernel: mlp_forward.1
= control target key start
LH: loop header
LB: loop body
LE: loop exit
PB: predicated region body
PF: predicated region fallthrough
CT: control target
= control target key end

     0   :  { %s3508_s0 = inlined_call_operand.vmem [shape: f32[1024,8], index: 0, kind: input, shape index: {}]   ;;  %s3509_s1 = inlined_call_operand.vmem [shape: f32[32,8], index: 1, kind: input, shape index: {}]   ;;  %s3510_s2 = inlined_call_operand.vmem [shape: f32[32,1], index: 2, kind: input, shape index: {}]   ;;  %s3511_s3 = inlined_call_operand.vmem [shape: f32[16,32], index: 3, kind: input, shape index: {}]   ;;  %s3512_s4 = inlined_call_operand.vmem [shape: f32[16,1], index: 4, kind: input, shape index: {}]   ;;  %s3513_s5 = inlined_call_operand.vmem [shape: f32[16,16], index: 5, kind: input, shape index: {}]   ;;  %s3514_s6 = inlined_call_operand.vmem [shape: f32[16,1], index: 6, kind: input, shape index: {}]   ;;  %s3515_s7 = inlined_call_operand.vmem [shape: f32[8,16], index: 7, kind: input, shape index: {}]   ;;  %s3516_s8 = inlined_call_operand.vmem [shape: f32[8,1], index: 8, kind: input, shape index: {}]   ;;  %s3517_s9 = inlined_call_operand.vmem [shape: f32[8,1], index: 9, kind: input, shape index: {}]   ;;  %s3518_s10 = inlined_call_operand.<no memory space> [shape: f32[1,1], index: 10, kind: input, shape index: {}]   ;;  %s3519_s11 = inlined_call_operand.hbm [shape: f32[1,1024], index: 11, kind: output, shape index: {}]  }
   0x1   :  { %v16_v0 = vstv %s3518_s10 }
   0x2   :  { %17 = vst [vmem:[#allocation2] sm:$0x1] %v16_v0 }
   0x3   :  { %v76_v1 = vld [vmem:[%s3508_s0 + $0xf8] sm:$0xff]  ;;  %vm197_vm0 = vcmask 64512   ;;  %v75_v5 = vld [vmem:[%s3508_s0 + $0xf0] sm:$0xff]  ;;  %v74_v9 = vld [vmem:[%s3508_s0 + $0xe8] sm:$0xff]  ;;  %v2671_v11 = vmov 0  }
   0x4   :  { %v108_v2 = vld [vmem:[%s3508_s0 + $0x1f8] sm:$0xff]  ;;  %2323 = vmatprep.subr.msk.mxu0 %vm197_vm0, %v76_v1  ;;  %v107_v6 = vld [vmem:[%s3508_s0 + $0x1f0] sm:$0xff]  ;;  %v106_v10 = vld [vmem:[%s3508_s0 + $0x1e8] sm:$0xff]  ;;  %2488 = vset.pattern.permute.xlu1 %v2671_v11 }
   0x5   :  { %v60_v3 = vld [vmem:[%s3508_s0 + $0x78] sm:$0xff]  ;;  %2363 = vmatprep.subr.msk.mxu1 %vm197_vm0, %v108_v2  ;;  %v59_v7 = vld [vmem:[%s3508_s0 + $0x70] sm:$0xff]  ;;  %2487 = vset.pattern.permute.xlu0 %v2671_v11  ;;  %v58_v12 = vld [vmem:[%s3508_s0 + $0x68] sm:$0xff] }
   0x6   :  { %v92_v4 = vld [vmem:[%s3508_s0 + $0x178] sm:$0xff]  ;;  %2324 = vmatpush3.xpose.msk.msra.mxu0 %vm197_vm0, %v60_v3  ;;  %v91_v8 = vld [vmem:[%s3508_s0 + $0x170] sm:$0xff]  ;;  %v90_v13 = vld [vmem:[%s3508_s0 + $0x168] sm:$0xff] }
   0x7   :  { %2364 = vmatpush3.xpose.msk.msra.mxu1 %vm197_vm0, %v92_v4  ;;  %2325 = vmatprep.subr.msk.mxu0 %vm197_vm0, %v75_v5  ;;  %v73_v14 = vld [vmem:[%s3508_s0 + $0xe0] sm:$0xff]  ;;  %v72_v18 = vld [vmem:[%s3508_s0 + $0xd8] sm:$0xff]  ;;  %v71_v22 = vld [vmem:[%s3508_s0 + $0xd0] sm:$0xff] }
   0x8   :  { %2365 = vmatprep.subr.msk.mxu1 %vm197_vm0, %v107_v6  ;;  %v105_v15 = vld [vmem:[%s3508_s0 + $0x1e0] sm:$0xff]  ;;  %v104_v19 = vld [vmem:[%s3508_s0 + $0x1d8] sm:$0xff]  ;;  %v103_v23 = vld [vmem:[%s3508_s0 + $0x1d0] sm:$0xff] }
   0x9   :  { %v57_v16 = vld [vmem:[%s3508_s0 + $0x60] sm:$0xff]  ;;  %v56_v20 = vld [vmem:[%s3508_s0 + $0x58] sm:$0xff]  ;;  %v55_v24 = vld [vmem:[%s3508_s0 + $0x50] sm:$0xff] }
   0xa   :  { %2326 = vmatpush3.xpose.msk.msra.mxu0 %vm197_vm0, %v59_v7  ;;  %v89_v17 = vld [vmem:[%s3508_s0 + $0x160] sm:$0xff]  ;;  %v88_v21 = vld [vmem:[%s3508_s0 + $0x158] sm:$0xff]  ;;  %v87_v25 = vld [vmem:[%s3508_s0 + $0x150] sm:$0xff] }
   0xb   :  { %2366 = vmatpush3.xpose.msk.msra.mxu1 %vm197_vm0, %v91_v8  ;;  %2327 = vmatprep.subr.msk.mxu0 %vm197_vm0, %v74_v9  ;;  %v70_v26 = vld [vmem:[%s3508_s0 + $0xc8] sm:$0xff]  ;;  %v2841_v28 = vld [vmem:[%s3509_s1] sm:$0xff]  ;;  %v68_v35 = vld [vmem:[%s3508_s0 + $0xb8] sm:$0xff] }
   0xc   :  { %2367 = vmatprep.subr.msk.mxu1 %vm197_vm0, %v106_v10  ;;  %v102_v27 = vld [vmem:[%s3508_s0 + $0x1c8] sm:$0xff]  ;;  %v69_v31 = vld [vmem:[%s3508_s0 + $0xc0] sm:$0xff]  ;;  %2355 = vmatprep.mubr.msk.f32.mxu0 %vm197_vm0, %v2841_v28  ;;  %v100_v36 = vld [vmem:[%s3508_s0 + $0x1b8] sm:$0xff] }
   0xd   :  { %v54_v29 = vld [vmem:[%s3508_s0 + $0x48] sm:$0xff]  ;;  %v101_v32 = vld [vmem:[%s3508_s0 + $0x1c0] sm:$0xff]  ;;  %2395 = vmatprep.mubr.msk.f32.mxu1 %vm197_vm0, %v2841_v28  ;;  %v52_v37 = vld [vmem:[%s3508_s0 + $0x38] sm:$0xff] }
   0xe   :  { %2328 = vmatpush3.xpose.msk.msra.mxu0 %vm197_vm0, %v58_v12  ;;  %v86_v30 = vld [vmem:[%s3508_s0 + $0x148] sm:$0xff]  ;;  %v53_v33 = vld [vmem:[%s3508_s0 + $0x40] sm:$0xff]  ;;  %v84_v38 = vld [vmem:[%s3508_s0 + $0x138] sm:$0xff] }
   0xf   :  { %2368 = vmatpush3.xpose.msk.msra.mxu1 %vm197_vm0, %v90_v13  ;;  %2329 = vmatprep.subr.msk.mxu0 %vm197_vm0, %v73_v14  ;;  %v85_v34 = vld [vmem:[%s3508_s0 + $0x140] sm:$0xff]  ;;  %v67_v39 = vld [vmem:[%s3508_s0 + $0xb0] sm:$0xff]  ;;  %v66_v43 = vld [vmem:[%s3508_s0 + $0xa8] sm:$0xff] }
  0x10   :  { %2369 = vmatprep.subr.msk.mxu1 %vm197_vm0, %v105_v15  ;;  %v99_v40 = vld [vmem:[%s3508_s0 + $0x1b0] sm:$0xff]  ;;  %v98_v44 = vld [vmem:[%s3508_s0 + $0x1a8] sm:$0xff]  ;;  %v65_v47 = vld [vmem:[%s3508_s0 + $0xa0] sm:$0xff] }
  0x11   :  { %v51_v41 = vld [vmem:[%s3508_s0 + $0x30] sm:$0xff]  ;;  %v50_v45 = vld [vmem:[%s3508_s0 + $0x28] sm:$0xff]  ;;  %v97_v48 = vld [vmem:[%s3508_s0 + $0x1a0] sm:$0xff] }
  0x12   :  { %2330 = vmatpush3.xpose.msk.msra.mxu0 %vm197_vm0, %v57_v16  ;;  %v83_v42 = vld [vmem:[%s3508_s0 + $0x130] sm:$0xff]  ;;  %v82_v46 = vld [vmem:[%s3508_s0 + $0x128] sm:$0xff]  ;;  %v49_v49 = vld [vmem:[%s3508_s0 + $0x20] sm:$0xff] }
  0x13   :  { %2370 = vmatpush3.xpose.msk.msra.mxu1 %vm197_vm0, %v89_v17  ;;  %2331 = vmatprep.subr.msk.mxu0 %vm197_vm0, %v72_v18  ;;  %v81_v50 = vld [vmem:[%s3508_s0 + $0x120] sm:$0xff]  ;;  %v64_v51 = vld [vmem:[%s3508_s0 + $0x98] sm:$0xff]  ;;  %v174_v53 = vld [vmem:[%s3510_s2 + $0x8] sm:$0xff] }
  0x14   :  { %2371 = vmatprep.subr.msk.mxu1 %vm197_vm0, %v104_v19  ;;  %v96_v52 = vld [vmem:[%s3508_s0 + $0x198] sm:$0xff]  ;;  %184 = vperm.xlu1 %2488, %v174_v53   ;;  %v173_v55 = vld [vmem:[%s3510_s2] sm:$0xff]  ;;  %v175_v56 = vld [vmem:[%s3510_s2 + $0x10] sm:$0xff] }
  0x15   :  { %v176_v54 = vld [vmem:[%s3510_s2 + $0x18] sm:$0xff] }
  0x16   :  { %2332 = vmatpush3.xpose.msk.msra.mxu0 %vm197_vm0, %v56_v20  ;;  %194 = vperm.xlu0 %2487, %v176_v54   ;;  %v48_v57 = vld [vmem:[%s3508_s0 + $0x18] sm:$0xff] }
  0x17   :  { %2372 = vmatpush3.xpose.msk.msra.mxu1 %vm197_vm0, %v88_v21  ;;  %2333 = vmatprep.subr.msk.mxu0 %vm197_vm0, %v71_v22  ;;  %v80_v58 = vld [vmem:[%s3508_s0 + $0x118] sm:$0xff] }
  0x18   :  { %2373 = vmatprep.subr.msk.mxu1 %vm197_vm0, %v103_v23 }
  0x1a   :  { %2334 = vmatpush3.xpose.msk.msra.mxu0 %vm197_vm0, %v55_v24 }
  0x1b   :  { %2374 = vmatpush3.xpose.msk.msra.mxu1 %vm197_vm0, %v87_v25  ;;  %2335 = vmatprep.subr.msk.mxu0 %vm197_vm0, %v70_v26 }
  0x1c   :  { %2375 = vmatprep.subr.msk.mxu1 %vm197_vm0, %v102_v27 }
  0x1e   :  { %2336 = vmatpush3.xpose.msk.msra.mxu0 %vm197_vm0, %v54_v29 }
  0x1f   :  { %2376 = vmatpush3.xpose.msk.msra.mxu1 %vm197_vm0, %v86_v30  ;;  %2337 = vmatprep.subr.msk.mxu0 %vm197_vm0, %v69_v31 }
  0x20   :  { %2377 = vmatprep.subr.msk.mxu1 %vm197_vm0, %v101_v32 }
  0x22   :  { %2338 = vmatpush3.xpose.msk.msra.mxu0 %vm197_vm0, %v53_v33 }
  0x23   :  { %2378 = vmatpush3.xpose.msk.msra.mxu1 %vm197_vm0, %v85_v34  ;;  %2339 = vmatprep.subr.msk.mxu0 %vm197_vm0, %v68_v35 }
  0x24   :  { %2379 = vmatprep.subr.msk.mxu1 %vm197_vm0, %v100_v36 }
  0x26   :  { %2340 = vmatpush3.xpose.msk.msra.mxu0 %vm197_vm0, %v52_v37 }
  0x27   :  { %2380 = vmatpush3.xpose.msk.msra.mxu1 %vm197_vm0, %v84_v38  ;;  %2341 = vmatprep.subr.msk.mxu0 %vm197_vm0, %v67_v39 }
  0x28   :  { %2381 = vmatprep.subr.msk.mxu1 %vm197_vm0, %v99_v40 }
  0x2a   :  { %2342 = vmatpush3.xpose.msk.msra.mxu0 %vm197_vm0, %v51_v41 }
  0x2b   :  { %2382 = vmatpush3.xpose.msk.msra.mxu1 %vm197_vm0, %v83_v42  ;;  %2343 = vmatprep.subr.msk.mxu0 %vm197_vm0, %v66_v43 }
  0x2c   :  { %2383 = vmatprep.subr.msk.mxu1 %vm197_vm0, %v98_v44 }
  0x2e   :  { %2344 = vmatpush3.xpose.msk.msra.mxu0 %vm197_vm0, %v50_v45 }
  0x2f   :  { %2384 = vmatpush3.xpose.msk.msra.mxu1 %vm197_vm0, %v82_v46  ;;  %2345 = vmatprep.subr.msk.mxu0 %vm197_vm0, %v65_v47 }
  0x30   :  { %2385 = vmatprep.subr.msk.mxu1 %vm197_vm0, %v97_v48 }
  0x32   :  { %2346 = vmatpush3.xpose.msk.msra.mxu0 %vm197_vm0, %v49_v49 }
  0x33   :  { %2386 = vmatpush3.xpose.msk.msra.mxu1 %vm197_vm0, %v81_v50  ;;  %2347 = vmatprep.subr.msk.mxu0 %vm197_vm0, %v64_v51 }
  0x34   :  { %2387 = vmatprep.subr.msk.mxu1 %vm197_vm0, %v96_v52 }
  0x35   :  { %18 = vsyncpa [#allocation4], 0  ;;  %v63_v59 = vld [vmem:[%s3508_s0 + $0x90] sm:$0xff]  ;;  %179 = vperm.xlu1 %2488, %v173_v55   ;;  %189 = vperm.xlu0 %2487, %v175_v56   ;;  %v985_v61 = vld [vmem:[%s3512_s4 + $0x8] sm:$0xff]  ;;  %vm996_vm1 = vcmask 261120   ;;  %vm1341_vm2 = vcmask 130048  }
  0x36   :  { %v95_v60 = vld [vmem:[%s3508_s0 + $0x190] sm:$0xff]  ;;  %2348 = vmatpush3.xpose.msk.msra.mxu0 %vm197_vm0, %v48_v57  ;;  %v984_v62 = vld [vmem:[%s3512_s4] sm:$0xff]  ;;  %v62_v1 = vld [vmem:[%s3508_s0 + $0x88] sm:$0xff] }
  0x37   :  { %2388 = vmatpush3.xpose.msk.msra.mxu1 %vm197_vm0, %v80_v58  ;;  %2349 = vmatprep.subr.msk.mxu0 %vm197_vm0, %v63_v59  ;;  %v47_v63 = vld [vmem:[%s3508_s0 + $0x10] sm:$0xff]  ;;  %v94_v2 = vld [vmem:[%s3508_s0 + $0x188] sm:$0xff]  ;;  %v1329_v4 = vld [vmem:[%s3514_s6] sm:$0xff] }
  0x38   :  { %2389 = vmatprep.subr.msk.mxu1 %vm197_vm0, %v95_v60  ;;  %v79_v0 = vld [vmem:[%s3508_s0 + $0x110] sm:$0xff]  ;;  %v1330_v3 = vld [vmem:[%s3514_s6 + $0x8] sm:$0xff]  ;;  %v61_v7 = vld [vmem:[%s3508_s0 + $0x80] sm:$0xff] }
  0x39   :  { %993 = vperm.xlu0 %2487, %v985_v61   ;;  %988 = vperm.xlu1 %2488, %v984_v62   ;;  %v46_v5 = vld [vmem:[%s3508_s0 + $0x8] sm:$0xff]  ;;  %v93_v8 = vld [vmem:[%s3508_s0 + $0x180] sm:$0xff]  ;;  %v140_v13 = vld [vmem:[%s3508_s0 + $0x2f8] sm:$0xff] }
  0x3a   :  { %2350 = vmatpush3.xpose.msk.msra.mxu0 %vm197_vm0, %v47_v63  ;;  %v78_v6 = vld [vmem:[%s3508_s0 + $0x108] sm:$0xff]  ;;  %v1673_v9 = vld [vmem:[%s3516_s8] sm:$0xff]  ;;  %v172_v14 = vld [vmem:[%s3508_s0 + $0x3f8] sm:$0xff] }
  0x3b   :  { %2390 = vmatpush3.xpose.msk.msra.mxu1 %vm197_vm0, %v79_v0  ;;  %2351 = vmatprep.subr.msk.mxu0 %vm197_vm0, %v62_v1  ;;  %v1974_v10 = vld [vmem:[%s3517_s9] sm:$0xff]  ;;  %v124_v15 = vld [vmem:[%s3508_s0 + $0x278] sm:$0xff]  ;;  %v3050_v17 = vld [vmem:[%s3509_s1 + $0x8] sm:$0xff] }
  0x3c   :  { %2391 = vmatprep.subr.msk.mxu1 %vm197_vm0, %v94_v2  ;;  %v45_v11 = vld [vmem:[%s3508_s0] sm:$0xff]  ;;  %v156_v16 = vld [vmem:[%s3508_s0 + $0x378] sm:$0xff]  ;;  %v139_v18 = vld [vmem:[%s3508_s0 + $0x2f0] sm:$0xff] }
  0x3d   :  { %1338 = vperm.xlu0 %2487, %v1330_v3   ;;  %1333 = vperm.xlu1 %2488, %v1329_v4   ;;  %v77_v12 = vld [vmem:[%s3508_s0 + $0x100] sm:$0xff]  ;;  %v171_v19 = vld [vmem:[%s3508_s0 + $0x3f0] sm:$0xff]  ;;  %v138_v23 = vld [vmem:[%s3508_s0 + $0x2e8] sm:$0xff] }
  0x3e   :  { %2352 = vmatpush3.xpose.msk.msra.mxu0 %vm197_vm0, %v46_v5  ;;  %v123_v20 = vld [vmem:[%s3508_s0 + $0x270] sm:$0xff]  ;;  %v170_v24 = vld [vmem:[%s3508_s0 + $0x3e8] sm:$0xff]  ;;  %v3108_v27 = vld [vmem:[%s3509_s1 + $0x18] sm:$0xff] }
  0x3f   :  { %2392 = vmatpush3.xpose.msk.msra.mxu1 %vm197_vm0, %v78_v6  ;;  %2353 = vmatprep.subr.msk.mxu0 %vm197_vm0, %v61_v7  ;;  %v155_v21 = vld [vmem:[%s3508_s0 + $0x370] sm:$0xff]  ;;  %v122_v25 = vld [vmem:[%s3508_s0 + $0x268] sm:$0xff]  ;;  %v137_v29 = vld [vmem:[%s3508_s0 + $0x2e0] sm:$0xff] }
  0x40   :  { %2393 = vmatprep.subr.msk.mxu1 %vm197_vm0, %v93_v8  ;;  %v3079_v22 = vld [vmem:[%s3509_s1 + $0x10] sm:$0xff]  ;;  %v154_v26 = vld [vmem:[%s3508_s0 + $0x368] sm:$0xff]  ;;  %v169_v30 = vld [vmem:[%s3508_s0 + $0x3e0] sm:$0xff] }
  0x41   :  { %1676 = vperm.xlu0 %2487, %v1673_v9   ;;  %1977 = vperm.xlu1 %2488, %v1974_v10   ;;  %v121_v31 = vld [vmem:[%s3508_s0 + $0x260] sm:$0xff]  ;;  %v136_v33 = vld [vmem:[%s3508_s0 + $0x2d8] sm:$0xff]  ;;  %v135_v38 = vld [vmem:[%s3508_s0 + $0x2d0] sm:$0xff] }
  0x42   :  { %2354 = vmatpush3.xpose.msk.msra.mxu0 %vm197_vm0, %v45_v11  ;;  %v153_v32 = vld [vmem:[%s3508_s0 + $0x360] sm:$0xff]  ;;  %v168_v34 = vld [vmem:[%s3508_s0 + $0x3d8] sm:$0xff]  ;;  %v167_v39 = vld [vmem:[%s3508_s0 + $0x3d0] sm:$0xff] }
  0x43   :  { %2394 = vmatpush3.xpose.msk.msra.mxu1 %vm197_vm0, %v77_v12  ;;  %2403 = vmatprep.subr.msk.mxu0 %vm197_vm0, %v140_v13  ;;  %v2036_v35 = vld [vmem:[#allocation2] sm:$0x1]  ;;  %v120_v36 = vld [vmem:[%s3508_s0 + $0x258] sm:$0xff]  ;;  %v119_v40 = vld [vmem:[%s3508_s0 + $0x250] sm:$0xff] }
  0x44   :  { %2443 = vmatprep.subr.msk.mxu1 %vm197_vm0, %v172_v14  ;;  %v152_v37 = vld [vmem:[%s3508_s0 + $0x358] sm:$0xff]  ;;  %v151_v41 = vld [vmem:[%s3508_s0 + $0x350] sm:$0xff]  ;;  %v134_v42 = vld [vmem:[%s3508_s0 + $0x2c8] sm:$0xff] }
  0x45   :  { %2356 = vmatmul.mubr.msk.f32.vlgmr.msra.gmra.mxu0 %vm197_vm0, %v2841_v28  ;;  %2039 = vperm.xlu0 %2487, %v2036_v35   ;;  %v166_v43 = vld [vmem:[%s3508_s0 + $0x3c8] sm:$0xff]  ;;  %v133_v46 = vld [vmem:[%s3508_s0 + $0x2c0] sm:$0xff]  ;;  %v132_v50 = vld [vmem:[%s3508_s0 + $0x2b8] sm:$0xff] }
  0x46   :  { %2396 = vmatmul.mubr.msk.f32.vlgmr.msra.gmra.mxu1 %vm197_vm0, %v2841_v28  ;;  %2404 = vmatpush3.xpose.msk.msra.mxu0 %vm197_vm0, %v124_v15  ;;  %v118_v44 = vld [vmem:[%s3508_s0 + $0x248] sm:$0xff]  ;;  %v165_v47 = vld [vmem:[%s3508_s0 + $0x3c0] sm:$0xff]  ;;  %v164_v51 = vld [vmem:[%s3508_s0 + $0x3b8] sm:$0xff] }
  0x47   :  { %2444 = vmatpush3.xpose.msk.msra.mxu1 %vm197_vm0, %v156_v16  ;;  %2357 = vmatprep.mubr.msk.f32.mxu0 %vm197_vm0, %v3050_v17  ;;  %v150_v45 = vld [vmem:[%s3508_s0 + $0x348] sm:$0xff]  ;;  %v117_v48 = vld [vmem:[%s3508_s0 + $0x240] sm:$0xff]  ;;  %v116_v52 = vld [vmem:[%s3508_s0 + $0x238] sm:$0xff] }
  0x48   :  { %2397 = vmatprep.mubr.msk.f32.mxu1 %vm197_vm0, %v3050_v17  ;;  %2405 = vmatprep.subr.msk.mxu0 %vm197_vm0, %v139_v18  ;;  %v149_v49 = vld [vmem:[%s3508_s0 + $0x340] sm:$0xff]  ;;  %v148_v53 = vld [vmem:[%s3508_s0 + $0x338] sm:$0xff]  ;;  %v131_v54 = vld [vmem:[%s3508_s0 + $0x2b0] sm:$0xff] }
  0x49   :  { %2445 = vmatprep.subr.msk.mxu1 %vm197_vm0, %v171_v19  ;;  %2358 = vmatmul.mubr.msk.f32.gmra.mxu0 %vm197_vm0, %v3050_v17  ;;  %v163_v55 = vld [vmem:[%s3508_s0 + $0x3b0] sm:$0xff]  ;;  %v130_v58 = vld [vmem:[%s3508_s0 + $0x2a8] sm:$0xff]  ;;  %v129_v62 = vld [vmem:[%s3508_s0 + $0x2a0] sm:$0xff] }
  0x4a   :  { %2398 = vmatmul.mubr.msk.f32.gmra.mxu1 %vm197_vm0, %v3050_v17  ;;  %2406 = vmatpush3.xpose.msk.msra.mxu0 %vm197_vm0, %v123_v20  ;;  %v115_v56 = vld [vmem:[%s3508_s0 + $0x230] sm:$0xff]  ;;  %v162_v59 = vld [vmem:[%s3508_s0 + $0x3a8] sm:$0xff]  ;;  %v161_v63 = vld [vmem:[%s3508_s0 + $0x3a0] sm:$0xff] }
  0x4b   :  { %2446 = vmatpush3.xpose.msk.msra.mxu1 %vm197_vm0, %v155_v21  ;;  %2359 = vmatprep.mubr.msk.f32.mxu0 %vm197_vm0, %v3079_v22  ;;  %v147_v57 = vld [vmem:[%s3508_s0 + $0x330] sm:$0xff]  ;;  %v114_v60 = vld [vmem:[%s3508_s0 + $0x228] sm:$0xff]  ;;  %v113_v0 = vld [vmem:[%s3508_s0 + $0x220] sm:$0xff] }
  0x4c   :  { %2399 = vmatprep.mubr.msk.f32.mxu1 %vm197_vm0, %v3079_v22  ;;  %2407 = vmatprep.subr.msk.mxu0 %vm197_vm0, %v138_v23  ;;  %v146_v61 = vld [vmem:[%s3508_s0 + $0x328] sm:$0xff]  ;;  %v145_v1 = vld [vmem:[%s3508_s0 + $0x320] sm:$0xff]  ;;  %v128_v2 = vld [vmem:[%s3508_s0 + $0x298] sm:$0xff] }
  0x4d   :  { %2447 = vmatprep.subr.msk.mxu1 %vm197_vm0, %v170_v24  ;;  %2360 = vmatmul.mubr.msk.f32.gmra.mxu0 %vm197_vm0, %v3079_v22  ;;  %v160_v3 = vld [vmem:[%s3508_s0 + $0x398] sm:$0xff]  ;;  %v127_v6 = vld [vmem:[%s3508_s0 + $0x290] sm:$0xff]  ;;  %v126_v10 = vld [vmem:[%s3508_s0 + $0x288] sm:$0xff] }
  0x4e   :  { %2400 = vmatmul.mubr.msk.f32.gmra.mxu1 %vm197_vm0, %v3079_v22  ;;  %2408 = vmatpush3.xpose.msk.msra.mxu0 %vm197_vm0, %v122_v25  ;;  %v112_v4 = vld [vmem:[%s3508_s0 + $0x218] sm:$0xff]  ;;  %v159_v7 = vld [vmem:[%s3508_s0 + $0x390] sm:$0xff]  ;;  %v158_v11 = vld [vmem:[%s3508_s0 + $0x388] sm:$0xff] }
  0x4f   :  { %2448 = vmatpush3.xpose.msk.msra.mxu1 %vm197_vm0, %v154_v26  ;;  %2361 = vmatprep.mubr.msk.f32.mxu0 %vm197_vm0, %v3108_v27  ;;  %v144_v5 = vld [vmem:[%s3508_s0 + $0x318] sm:$0xff]  ;;  %v111_v8 = vld [vmem:[%s3508_s0 + $0x210] sm:$0xff]  ;;  %v110_v12 = vld [vmem:[%s3508_s0 + $0x208] sm:$0xff] }
  0x50   :  { %2401 = vmatprep.mubr.msk.f32.mxu1 %vm197_vm0, %v3108_v27  ;;  %2409 = vmatprep.subr.msk.mxu0 %vm197_vm0, %v137_v29  ;;  %v143_v9 = vld [vmem:[%s3508_s0 + $0x310] sm:$0xff]  ;;  %v142_v13 = vld [vmem:[%s3508_s0 + $0x308] sm:$0xff]  ;;  %v125_v14 = vld [vmem:[%s3508_s0 + $0x280] sm:$0xff] }
  0x51   :  { %2449 = vmatprep.subr.msk.mxu1 %vm197_vm0, %v169_v30  ;;  %2362 = vmatmul.mubr.msk.f32.gmra.mxu0 %vm197_vm0, %v3108_v27  ;;  %v157_v15 = vld [vmem:[%s3508_s0 + $0x380] sm:$0xff] }
  0x52   :  { %2402 = vmatmul.mubr.msk.f32.gmra.mxu1 %vm197_vm0, %v3108_v27  ;;  %2410 = vmatpush3.xpose.msk.msra.mxu0 %vm197_vm0, %v121_v31  ;;  %v109_v16 = vld [vmem:[%s3508_s0 + $0x200] sm:$0xff] }
  0x53   :  { %2450 = vmatpush3.xpose.msk.msra.mxu1 %vm197_vm0, %v153_v32  ;;  %2411 = vmatprep.subr.msk.mxu0 %vm197_vm0, %v136_v33  ;;  %v141_v18 = vld [vmem:[%s3508_s0 + $0x300] sm:$0xff] }
  0x54   :  { %2451 = vmatprep.subr.msk.mxu1 %vm197_vm0, %v168_v34  ;;  %2435 = vmatprep.mubr.msk.f32.mxu0 %vm197_vm0, %v2841_v28 }
  0x55   :  { %2475 = vmatprep.mubr.msk.f32.mxu1 %vm197_vm0, %v2841_v28 }
  0x56   :  { %2412 = vmatpush3.xpose.msk.msra.mxu0 %vm197_vm0, %v120_v36 }
  0x57   :  { %2452 = vmatpush3.xpose.msk.msra.mxu1 %vm197_vm0, %v152_v37  ;;  %2413 = vmatprep.subr.msk.mxu0 %vm197_vm0, %v135_v38 }
  0x58   :  { %2453 = vmatprep.subr.msk.mxu1 %vm197_vm0, %v167_v39 }
  0x5a   :  { %2414 = vmatpush3.xpose.msk.msra.mxu0 %vm197_vm0, %v119_v40 }
  0x5b   :  { %2454 = vmatpush3.xpose.msk.msra.mxu1 %vm197_vm0, %v151_v41  ;;  %2415 = vmatprep.subr.msk.mxu0 %vm197_vm0, %v134_v42 }
  0x5c   :  { %2455 = vmatprep.subr.msk.mxu1 %vm197_vm0, %v166_v43 }
  0x5e   :  { %2416 = vmatpush3.xpose.msk.msra.mxu0 %vm197_vm0, %v118_v44 }
  0x5f   :  { %2456 = vmatpush3.xpose.msk.msra.mxu1 %vm197_vm0, %v150_v45  ;;  %2417 = vmatprep.subr.msk.mxu0 %vm197_vm0, %v133_v46 }
  0x60   :  { %2457 = vmatprep.subr.msk.mxu1 %vm197_vm0, %v165_v47 }
  0x62   :  { %2418 = vmatpush3.xpose.msk.msra.mxu0 %vm197_vm0, %v117_v48 }
  0x63   :  { %2458 = vmatpush3.xpose.msk.msra.mxu1 %vm197_vm0, %v149_v49  ;;  %2419 = vmatprep.subr.msk.mxu0 %vm197_vm0, %v132_v50 }
  0x64   :  { %2459 = vmatprep.subr.msk.mxu1 %vm197_vm0, %v164_v51 }
  0x66   :  { %2420 = vmatpush3.xpose.msk.msra.mxu0 %vm197_vm0, %v116_v52 }
  0x67   :  { %2460 = vmatpush3.xpose.msk.msra.mxu1 %vm197_vm0, %v148_v53  ;;  %2421 = vmatprep.subr.msk.mxu0 %vm197_vm0, %v131_v54 }
  0x68   :  { %2461 = vmatprep.subr.msk.mxu1 %vm197_vm0, %v163_v55 }
  0x6a   :  { %2422 = vmatpush3.xpose.msk.msra.mxu0 %vm197_vm0, %v115_v56 }
  0x6b   :  { %2462 = vmatpush3.xpose.msk.msra.mxu1 %vm197_vm0, %v147_v57  ;;  %2423 = vmatprep.subr.msk.mxu0 %vm197_vm0, %v130_v58 }
  0x6c   :  { %2463 = vmatprep.subr.msk.mxu1 %vm197_vm0, %v162_v59 }
  0x6e   :  { %2424 = vmatpush3.xpose.msk.msra.mxu0 %vm197_vm0, %v114_v60 }
  0x6f   :  { %2464 = vmatpush3.xpose.msk.msra.mxu1 %vm197_vm0, %v146_v61  ;;  %2425 = vmatprep.subr.msk.mxu0 %vm197_vm0, %v129_v62 }
  0x70   :  { %2465 = vmatprep.subr.msk.mxu1 %vm197_vm0, %v161_v63 }
  0x72   :  { %2426 = vmatpush3.xpose.msk.msra.mxu0 %vm197_vm0, %v113_v0 }
  0x73   :  { %2466 = vmatpush3.xpose.msk.msra.mxu1 %vm197_vm0, %v145_v1  ;;  %2427 = vmatprep.subr.msk.mxu0 %vm197_vm0, %v128_v2 }
  0x74   :  { %2467 = vmatprep.subr.msk.mxu1 %vm197_vm0, %v160_v3 }
  0x76   :  { %2428 = vmatpush3.xpose.msk.msra.mxu0 %vm197_vm0, %v112_v4 }
  0x77   :  { %2468 = vmatpush3.xpose.msk.msra.mxu1 %vm197_vm0, %v144_v5  ;;  %2429 = vmatprep.subr.msk.mxu0 %vm197_vm0, %v127_v6  ;;  %v3393_v5 = vld [vmem:[%s3511_s3] sm:$0xff] }
  0x78   :  { %2469 = vmatprep.subr.msk.mxu1 %vm197_vm0, %v159_v7 }
  0x7a   :  { %2430 = vmatpush3.xpose.msk.msra.mxu0 %vm197_vm0, %v111_v8  ;;  %v3403_v8 = vld [vmem:[%s3511_s3 + $0x8] sm:$0xff] }
  0x7b   :  { %2470 = vmatpush3.xpose.msk.msra.mxu1 %vm197_vm0, %v143_v9  ;;  %2431 = vmatprep.subr.msk.mxu0 %vm197_vm0, %v126_v10 }
  0x7c   :  { %2471 = vmatprep.subr.msk.mxu1 %vm197_vm0, %v158_v11 }
  0x7e   :  { %2432 = vmatpush3.xpose.msk.msra.mxu0 %vm197_vm0, %v110_v12 }
  0x7f   :  { %2472 = vmatpush3.xpose.msk.msra.mxu1 %vm197_vm0, %v142_v13  ;;  %2433 = vmatprep.subr.msk.mxu0 %vm197_vm0, %v125_v14 }
  0x80   :  { %2473 = vmatprep.subr.msk.mxu1 %vm197_vm0, %v157_v15 }
  0x82   :  { %2434 = vmatpush3.xpose.msk.msra.mxu0 %vm197_vm0, %v109_v16 }
  0x83   :  { %2474 = vmatpush3.xpose.msk.msra.mxu1 %vm197_vm0, %v141_v18 }
  0x85   :  { %2436 = vmatmul.mubr.msk.f32.vlgmr.msra.gmra.mxu0 %vm197_vm0, %v2841_v28 }
  0x86   :  { %2476 = vmatmul.mubr.msk.f32.vlgmr.msra.gmra.mxu1 %vm197_vm0, %v2841_v28  ;;  %2437 = vmatprep.mubr.msk.f32.mxu0 %vm197_vm0, %v3050_v17  ;;  %v2672_v28 = vmov 0.0  }
  0x87   :  { %2477 = vmatprep.mubr.msk.f32.mxu1 %vm197_vm0, %v3050_v17 }
  0x89   :  { %2438 = vmatmul.mubr.msk.f32.gmra.mxu0 %vm197_vm0, %v3050_v17 }
  0x8a   :  { %2478 = vmatmul.mubr.msk.f32.gmra.mxu1 %vm197_vm0, %v3050_v17  ;;  %2439 = vmatprep.mubr.msk.f32.mxu0 %vm197_vm0, %v3079_v22 }
  0x8b   :  { %2479 = vmatprep.mubr.msk.f32.mxu1 %vm197_vm0, %v3079_v22 }
  0x8d   :  { %2440 = vmatmul.mubr.msk.f32.gmra.mxu0 %vm197_vm0, %v3079_v22 }
  0x8e   :  { %2480 = vmatmul.mubr.msk.f32.gmra.mxu1 %vm197_vm0, %v3079_v22  ;;  %2441 = vmatprep.mubr.msk.f32.mxu0 %vm197_vm0, %v3108_v27 }
  0x8f   :  { %2481 = vmatprep.mubr.msk.f32.mxu1 %vm197_vm0, %v3108_v27  ;;  %v3368_v25 = vpop.permute.xlu1 %184 }
  0x91   :  { %2442 = vmatmul.mubr.msk.f32.gmra.mxu0 %vm197_vm0, %v3108_v27  ;;  %v3366_v17 = vpop.permute.xlu0 %194 }
  0x92   :  { %2482 = vmatmul.mubr.msk.f32.gmra.mxu1 %vm197_vm0, %v3108_v27  ;;  %1067 = vmatprep.mubr.f32.mxu0 %v2672_v28 }
  0x93   :  { %1144 = vmatprep.mubr.f32.mxu1 %v2672_v28 }
  0xb0   :  { %v3370_v26 = vpop.permute.xlu0 %189  ;;  %v3379_v45 = vpop.permute.xlu1 %179 }
 0x105   :  { %v660_v19 = vpop.f32.mrf.mxu0 }
 0x106   :  { %v749_v20 = vpop.f32.mrf.mxu1  ;;  %v661_v51 = vadd.f32 %v660_v19, %v3379_v45 }
 0x107   :  { %v662_v21 = vpop.f32.mrf.mxu0  ;;  %v750_v54 = vadd.f32 %v749_v20, %v3379_v45 }
 0x108   :  { %v751_v22 = vpop.f32.mrf.mxu1  ;;  %v663_v52 = vadd.f32 %v662_v21, %v3379_v45 }
 0x109   :  { %v666_v23 = vpop.f32.mrf.mxu0  ;;  %v752_v53 = vadd.f32 %v751_v22, %v3379_v45 }
 0x10a   :  { %v755_v24 = vpop.f32.mrf.mxu1  ;;  %v667_v29 = vadd.f32 %v666_v23, %v3368_v25 }
 0x10b   :  { %v668_v27 = vpop.f32.mrf.mxu0  ;;  %v756_v50 = vadd.f32 %v755_v24, %v3368_v25 }
 0x10c   :  { %v757_v30 = vpop.f32.mrf.mxu1  ;;  %v669_v31 = vadd.f32 %v668_v27, %v3368_v25  ;;  %2489 = vtanh.f32 %v667_v29 }
 0x10d   :  { %v672_v32 = vpop.f32.mrf.mxu0  ;;  %v758_v49 = vadd.f32 %v757_v30, %v3368_v25 }
 0x10e   :  { %v761_v33 = vpop.f32.mrf.mxu1  ;;  %v673_v34 = vadd.f32 %v672_v32, %v3370_v26  ;;  %2491 = vtanh.f32 %v669_v31 }
 0x10f   :  { %v674_v35 = vpop.f32.mrf.mxu0  ;;  %v762_v48 = vadd.f32 %v761_v33, %v3370_v26 }
 0x110   :  { %v763_v36 = vpop.f32.mrf.mxu1  ;;  %v675_v37 = vadd.f32 %v674_v35, %v3370_v26  ;;  %2493 = vtanh.f32 %v673_v34 }
 0x111   :  { %v764_v38 = vadd.f32 %v763_v36, %v3370_v26  ;;  %v678_v39 = vpop.f32.mrf.mxu0 }
 0x112   :  { %v767_v40 = vpop.f32.mrf.mxu1  ;;  %v679_v41 = vadd.f32 %v678_v39, %v3366_v17  ;;  %2495 = vtanh.f32 %v675_v37 }
 0x113   :  { %v768_v42 = vadd.f32 %v767_v40, %v3366_v17  ;;  %v680_v43 = vpop.f32.mrf.mxu0  ;;  %2497 = vtanh.f32 %v764_v38 }
 0x114   :  { %v769_v44 = vpop.f32.mrf.mxu1  ;;  %2499 = vtanh.f32 %v679_v41  ;;  %v681_v46 = vadd.f32 %v680_v43, %v3366_v17 }
 0x115   :  { %v770_v47 = vadd.f32 %v769_v44, %v3366_v17  ;;  %2501 = vtanh.f32 %v768_v42 }
 0x116   :  { %2503 = vtanh.f32 %v681_v46 }
 0x117   :  { %2505 = vtanh.f32 %v770_v47 }
 0x118   :  { %2507 = vtanh.f32 %v762_v48 }
 0x119   :  { %2509 = vtanh.f32 %v758_v49  ;;  %v2490_v55 = vpop.eup %2489 }
 0x11a   :  { %2511 = vtanh.f32 %v756_v50 }
 0x11b   :  { %2513 = vtanh.f32 %v661_v51  ;;  %v2492_v56 = vpop.eup %2491 }
 0x11c   :  { %2515 = vtanh.f32 %v663_v52 }
 0x11d   :  { %2517 = vtanh.f32 %v752_v53  ;;  %v2494_v57 = vpop.eup %2493 }
 0x11e   :  { %2519 = vtanh.f32 %v750_v54 }
 0x11f   :  { %v2496_v58 = vpop.eup %2495 }
 0x120   :  { %v2498_v59 = vpop.eup %2497 }
 0x121   :  { %v2500_v60 = vpop.eup %2499 }
 0x122   :  { %v2502_v61 = vpop.eup %2501 }
 0x123   :  { %v2504_v62 = vpop.eup %2503 }
 0x124   :  { %v2506_v63 = vpop.eup %2505  ;;  %1027 = vmatprep.subr.mxu0 %v2504_v62 }
 0x125   :  { %v2508_v0 = vpop.eup %2507  ;;  %1104 = vmatprep.subr.mxu1 %v2506_v63  ;;  %1028 = vmatpush1.msra.mxu0 %v2500_v60 }
 0x126   :  { %v2510_v1 = vpop.eup %2509  ;;  %1105 = vmatpush1.msra.mxu1 %v2502_v61  ;;  %1029 = vmatprep.subr.mxu0 %v2496_v58 }
 0x127   :  { %v2512_v2 = vpop.eup %2511  ;;  %1106 = vmatprep.subr.mxu1 %v2498_v59  ;;  %1030 = vmatpush1.msra.mxu0 %v2494_v57  ;;  %v3440_v59 = vpop.permute.xlu1 %988 }
 0x128   :  { %v2514_v3 = vpop.eup %2513  ;;  %1107 = vmatpush1.msra.mxu1 %v2508_v0  ;;  %1031 = vmatprep.subr.mxu0 %v2492_v56 }
 0x129   :  { %v2516_v4 = vpop.eup %2515  ;;  %1108 = vmatprep.subr.mxu1 %v2510_v1  ;;  %1032 = vmatpush1.msra.mxu0 %v2490_v55  ;;  %v3444_v1 = vpop.permute.xlu0 %993 }
 0x12a   :  { %v2518_v6 = vpop.eup %2517  ;;  %1109 = vmatpush1.msra.mxu1 %v2512_v2  ;;  %1033 = vmatprep.subr.mxu0 %v2516_v4 }
 0x12b   :  { %v2520_v7 = vpop.eup %2519  ;;  %1110 = vmatprep.subr.mxu1 %v2518_v6  ;;  %1034 = vmatpush1.msra.mxu0 %v2514_v3 }
 0x12c   :  { %1111 = vmatpush1.msra.mxu1 %v2520_v7  ;;  %2303 = vmatmul.mubr.msk.f32.vlgmr.msra.gmra.mxu0 %vm996_vm1, %v3393_v5 }
 0x12d   :  { %2305 = vmatmul.mubr.msk.f32.vlgmr.msra.gmra.mxu1 %vm996_vm1, %v3393_v5  ;;  %1073 = vmatprep.mubr.f32.mxu0 %v2672_v28 }
 0x12e   :  { %1150 = vmatprep.mubr.f32.mxu1 %v2672_v28 }
 0x130   :  { %2304 = vmatmul.mubr.msk.f32.gmra.mxu0 %vm996_vm1, %v3403_v8 }
 0x131   :  { %2306 = vmatmul.mubr.msk.f32.gmra.mxu1 %vm996_vm1, %v3403_v8  ;;  %1221 = vmatprep.mubr.f32.mxu0 %v2672_v28 }
 0x132   :  { %1298 = vmatprep.mubr.f32.mxu1 %v2672_v28 }
 0x145   :  { %v838_v9 = vpop.f32.mrf.mxu0 }
 0x146   :  { %v927_v10 = vpop.f32.mrf.mxu1  ;;  %v839_v15 = vadd.f32 %v838_v9, %v3379_v45 }
 0x147   :  { %v840_v11 = vpop.f32.mrf.mxu0  ;;  %v928_v44 = vadd.f32 %v927_v10, %v3379_v45 }
 0x148   :  { %v929_v12 = vpop.f32.mrf.mxu1  ;;  %v841_v19 = vadd.f32 %v840_v11, %v3379_v45  ;;  %2521 = vtanh.f32 %v839_v15 }
 0x149   :  { %v844_v13 = vpop.f32.mrf.mxu0  ;;  %v930_v43 = vadd.f32 %v929_v12, %v3379_v45 }
 0x14a   :  { %v933_v14 = vpop.f32.mrf.mxu1  ;;  %v845_v20 = vadd.f32 %v844_v13, %v3368_v25  ;;  %2523 = vtanh.f32 %v841_v19  ;;  %v1327_v19 = vld [vmem:[%s3513_s5] sm:$0xff] }
 0x14b   :  { %v846_v16 = vpop.f32.mrf.mxu0  ;;  %v934_v42 = vadd.f32 %v933_v14, %v3368_v25 }
 0x14c   :  { %v935_v18 = vpop.f32.mrf.mxu1  ;;  %v847_v23 = vadd.f32 %v846_v16, %v3368_v25  ;;  %2525 = vtanh.f32 %v845_v20 }
 0x14d   :  { %v850_v21 = vpop.f32.mrf.mxu0  ;;  %v936_v41 = vadd.f32 %v935_v18, %v3368_v25 }
 0x14e   :  { %v939_v22 = vpop.f32.mrf.mxu1  ;;  %v851_v24 = vadd.f32 %v850_v21, %v3370_v26  ;;  %2527 = vtanh.f32 %v847_v23 }
 0x14f   :  { %v852_v29 = vpop.f32.mrf.mxu0  ;;  %v940_v40 = vadd.f32 %v939_v22, %v3370_v26  ;;  %v1328_v22 = vld [vmem:[%s3513_s5 + $0x8] sm:$0xff] }
 0x150   :  { %v941_v27 = vpop.f32.mrf.mxu1  ;;  %v853_v30 = vadd.f32 %v852_v29, %v3370_v26  ;;  %2529 = vtanh.f32 %v851_v24 }
 0x151   :  { %v856_v31 = vpop.f32.mrf.mxu0  ;;  %v942_v39 = vadd.f32 %v941_v27, %v3370_v26 }
 0x152   :  { %v945_v32 = vpop.f32.mrf.mxu1  ;;  %v857_v33 = vadd.f32 %v856_v31, %v3366_v17  ;;  %2531 = vtanh.f32 %v853_v30 }
 0x153   :  { %v858_v34 = vpop.f32.mrf.mxu0  ;;  %v946_v36 = vadd.f32 %v945_v32, %v3366_v17 }
 0x154   :  { %v947_v35 = vpop.f32.mrf.mxu1  ;;  %v859_v37 = vadd.f32 %v858_v34, %v3366_v17  ;;  %2533 = vtanh.f32 %v857_v33 }
 0x155   :  { %v948_v38 = vadd.f32 %v947_v35, %v3366_v17  ;;  %v2522_v17 = vpop.eup %2521 }
 0x156   :  { %2535 = vtanh.f32 %v859_v37 }
 0x157   :  { %2537 = vtanh.f32 %v948_v38  ;;  %v2524_v46 = vpop.eup %2523 }
 0x158   :  { %2539 = vtanh.f32 %v946_v36 }
 0x159   :  { %2541 = vtanh.f32 %v942_v39  ;;  %v2526_v47 = vpop.eup %2525 }
 0x15a   :  { %2543 = vtanh.f32 %v940_v40 }
 0x15b   :  { %2545 = vtanh.f32 %v936_v41  ;;  %v2528_v26 = vpop.eup %2527 }
 0x15c   :  { %2547 = vtanh.f32 %v934_v42 }
 0x15d   :  { %2549 = vtanh.f32 %v930_v43  ;;  %v2530_v48 = vpop.eup %2529 }
 0x15e   :  { %2551 = vtanh.f32 %v928_v44 }
 0x15f   :  { %v2532_v49 = vpop.eup %2531 }
 0x161   :  { %v2534_v50 = vpop.eup %2533 }
 0x163   :  { %v2536_v51 = vpop.eup %2535 }
 0x164   :  { %v2538_v25 = vpop.eup %2537  ;;  %1181 = vmatprep.subr.mxu0 %v2536_v51 }
 0x165   :  { %v2540_v52 = vpop.eup %2539  ;;  %1258 = vmatprep.subr.mxu1 %v2538_v25  ;;  %1182 = vmatpush1.msra.mxu0 %v2534_v50  ;;  %v3482_v50 = vpop.permute.xlu1 %1333 }
 0x166   :  { %v2542_v53 = vpop.eup %2541  ;;  %1259 = vmatpush1.msra.mxu1 %v2540_v52  ;;  %1183 = vmatprep.subr.mxu0 %v2532_v49 }
 0x167   :  { %v2544_v45 = vpop.eup %2543  ;;  %1260 = vmatprep.subr.mxu1 %v2542_v53  ;;  %1184 = vmatpush1.msra.mxu0 %v2530_v48 }
 0x168   :  { %v2546_v54 = vpop.eup %2545  ;;  %1261 = vmatpush1.msra.mxu1 %v2544_v45  ;;  %1185 = vmatprep.subr.mxu0 %v2528_v26 }
 0x169   :  { %v2548_v55 = vpop.eup %2547  ;;  %1262 = vmatprep.subr.mxu1 %v2546_v54  ;;  %1186 = vmatpush1.msra.mxu0 %v2526_v47  ;;  %v1339_v54 = vpop.permute.xlu0 %1338 }
 0x16a   :  { %v2550_v56 = vpop.eup %2549  ;;  %1263 = vmatpush1.msra.mxu1 %v2548_v55  ;;  %1187 = vmatprep.subr.mxu0 %v2524_v46 }
 0x16b   :  { %v2552_v57 = vpop.eup %2551  ;;  %1264 = vmatprep.subr.mxu1 %v2550_v56  ;;  %1188 = vmatpush1.msra.mxu0 %v2522_v17 }
 0x16c   :  { %1265 = vmatpush1.msra.mxu1 %v2552_v57  ;;  %2307 = vmatmul.mubr.msk.f32.vlgmr.msra.gmra.mxu0 %vm996_vm1, %v3393_v5 }
 0x16d   :  { %2309 = vmatmul.mubr.msk.f32.vlgmr.msra.gmra.mxu1 %vm996_vm1, %v3393_v5  ;;  %1227 = vmatprep.mubr.f32.mxu0 %v2672_v28 }
 0x16e   :  { %1304 = vmatprep.mubr.f32.mxu1 %v2672_v28 }
 0x170   :  { %2308 = vmatmul.mubr.msk.f32.gmra.mxu0 %vm996_vm1, %v3403_v8 }
 0x171   :  { %2310 = vmatmul.mubr.msk.f32.gmra.mxu1 %vm996_vm1, %v3403_v8  ;;  %1412 = vmatprep.mubr.f32.mxu0 %v2672_v28 }
 0x172   :  { %1489 = vmatprep.mubr.f32.mxu1 %v2672_v28 }
 0x1ec   :  { %v1069_v58 = vpop.f32.mrf.mxu0 }
 0x1ed   :  { %v1146_v60 = vpop.f32.mrf.mxu1  ;;  %v1070_v61 = vadd.f32 %v1069_v58, %v3440_v59 }
 0x1ee   :  { %v1071_v62 = vpop.f32.mrf.mxu0  ;;  %v1147_v11 = vadd.f32 %v1146_v60, %v3440_v59 }
 0x1ef   :  { %v1072_v63 = vadd.f32 %v1071_v62, %v3440_v59  ;;  %v1148_v0 = vpop.f32.mrf.mxu1  ;;  %2553 = vtanh.f32 %v1070_v61 }
 0x1f0   :  { %v1075_v2 = vpop.f32.mrf.mxu0  ;;  %v1149_v9 = vadd.f32 %v1148_v0, %v3440_v59 }
 0x1f1   :  { %v1076_v3 = vadd.f32 %v1075_v2, %v3444_v1  ;;  %v1152_v4 = vpop.f32.mrf.mxu1  ;;  %2555 = vtanh.f32 %v1072_v63 }
 0x1f2   :  { %v1077_v5 = vpop.f32.mrf.mxu0  ;;  %v1153_v6 = vadd.f32 %v1152_v4, %v3444_v1 }
 0x1f3   :  { %v1078_v7 = vadd.f32 %v1077_v5, %v3444_v1  ;;  %v1154_v8 = vpop.f32.mrf.mxu1  ;;  %2557 = vtanh.f32 %v1076_v3 }
 0x1f4   :  { %v1155_v10 = vadd.f32 %v1154_v8, %v3444_v1 }
 0x1f5   :  { %2559 = vtanh.f32 %v1078_v7  ;;  %v1672_v7 = vld [vmem:[%s3515_s7] sm:$0xff]  ;;  %s2674_s7 = smov [#allocation3]  }
 0x1f6   :  { %2561 = vtanh.f32 %v1155_v10  ;;  %s2151_s13 = sshll.u32 %s2674_s7, 4  ;;  %s2152_s13 = int_to_ptr.vmem [resolvable:$true] %s2151_s13 }
 0x1f7   :  { %2563 = vtanh.f32 %v1153_v6  ;;  %s2649_s14 = scalar_lea.vmem %s2152_s13, 128  ;;  %p2654_p1 = scmp.lt.s32.totalorder %s2152_s13, %s2152_s13 }
 0x1f8   :  { %2565 = vtanh.f32 %v1149_v9  ;;  %p2650_p0 = scmp.ne.s32.totalorder %s2152_s13, %s2649_s14  ;;  %p2655_p2 = scmp.lt.s32.totalorder %s2649_s14, %s2649_s14 }
 0x1f9   :  { %2567 = vtanh.f32 %v1147_v11 }
 0x1fa   :  { %p2656_p3 = por %p2655_p2, %p2654_p1 }
 0x1fc   :  { %v2554_v12 = vpop.eup %2553  ;;  %p2657_p4 = pnand %p2656_p3, %p2650_p0 }
 0x1fe   :  { %v2556_v13 = vpop.eup %2555 }
 0x200   :  { %v2558_v14 = vpop.eup %2557 }
 0x202   :  { %v2560_v15 = vpop.eup %2559 }
 0x203   :  { %v2562_v16 = vpop.eup %2561  ;;  %1376 = vmatprep.subr.mxu0 %v2560_v15 }
 0x204   :  { %v2564_v18 = vpop.eup %2563  ;;  %1453 = vmatprep.subr.mxu1 %v2562_v16  ;;  %1377 = vmatpush1.msra.mxu0 %v2558_v14 }
 0x205   :  { %v2566_v20 = vpop.eup %2565  ;;  %1454 = vmatpush1.msra.mxu1 %v2564_v18  ;;  %1378 = vmatprep.subr.mxu0 %v2556_v13 }
 0x206   :  { %v2568_v21 = vpop.eup %2567  ;;  %1455 = vmatprep.subr.mxu1 %v2566_v20  ;;  %1379 = vmatpush1.msra.mxu0 %v2554_v12 }
 0x207   :  { %1456 = vmatpush1.msra.mxu1 %v2568_v21  ;;  %2311 = vmatmul.mubr.msk.f32.vlgmr.msra.gmra.mxu0 %vm1341_vm2, %v1327_v19 }
 0x208   :  { %2313 = vmatmul.mubr.msk.f32.vlgmr.msra.gmra.mxu1 %vm1341_vm2, %v1327_v19  ;;  %1418 = vmatprep.mubr.f32.mxu0 %v2672_v28 }
 0x209   :  { %1495 = vmatprep.mubr.f32.mxu1 %v2672_v28 }
 0x20b   :  { %2312 = vmatmul.mubr.msk.f32.gmra.mxu0 %vm1341_vm2, %v1328_v22 }
 0x20c   :  { %2314 = vmatmul.mubr.msk.f32.gmra.mxu1 %vm1341_vm2, %v1328_v22  ;;  %1566 = vmatprep.mubr.f32.mxu0 %v2672_v28 }
 0x20d   :  { %1643 = vmatprep.mubr.f32.mxu1 %v2672_v28 }
 0x22c   :  { %v1223_v23 = vpop.f32.mrf.mxu0 }
 0x22d   :  { %v1300_v24 = vpop.f32.mrf.mxu1  ;;  %v1224_v29 = vadd.f32 %v1223_v23, %v3440_v59 }
 0x22e   :  { %v1225_v27 = vpop.f32.mrf.mxu0  ;;  %v1301_v41 = vadd.f32 %v1300_v24, %v3440_v59 }
 0x22f   :  { %v1226_v30 = vadd.f32 %v1225_v27, %v3440_v59  ;;  %v1302_v31 = vpop.f32.mrf.mxu1  ;;  %2569 = vtanh.f32 %v1224_v29 }
 0x230   :  { %v1229_v32 = vpop.f32.mrf.mxu0  ;;  %v1303_v39 = vadd.f32 %v1302_v31, %v3440_v59 }
 0x231   :  { %v1230_v33 = vadd.f32 %v1229_v32, %v3444_v1  ;;  %v1306_v34 = vpop.f32.mrf.mxu1  ;;  %2571 = vtanh.f32 %v1226_v30 }
 0x232   :  { %v1231_v35 = vpop.f32.mrf.mxu0  ;;  %v1307_v36 = vadd.f32 %v1306_v34, %v3444_v1 }
 0x233   :  { %v1232_v37 = vadd.f32 %v1231_v35, %v3444_v1  ;;  %v1308_v38 = vpop.f32.mrf.mxu1  ;;  %2573 = vtanh.f32 %v1230_v33 }
 0x234   :  { %v1309_v40 = vadd.f32 %v1308_v38, %v3444_v1 }
 0x235   :  { %2575 = vtanh.f32 %v1232_v37 }
 0x236   :  { %2577 = vtanh.f32 %v1309_v40 }
 0x237   :  { %2579 = vtanh.f32 %v1307_v36 }
 0x238   :  { %2581 = vtanh.f32 %v1303_v39 }
 0x239   :  { %2583 = vtanh.f32 %v1301_v41  ;;  %v1677_v41 = vpop.permute.xlu0 %1676 }
 0x23c   :  { %v2570_v42 = vpop.eup %2569 }
 0x23e   :  { %v2572_v43 = vpop.eup %2571 }
 0x240   :  { %v2574_v44 = vpop.eup %2573 }
 0x242   :  { %v2576_v17 = vpop.eup %2575 }
 0x243   :  { %v2578_v46 = vpop.eup %2577  ;;  %1530 = vmatprep.subr.mxu0 %v2576_v17 }
 0x244   :  { %v2580_v47 = vpop.eup %2579  ;;  %1607 = vmatprep.subr.mxu1 %v2578_v46  ;;  %1531 = vmatpush1.msra.mxu0 %v2574_v44 }
 0x245   :  { %v2582_v26 = vpop.eup %2581  ;;  %1608 = vmatpush1.msra.mxu1 %v2580_v47  ;;  %1532 = vmatprep.subr.mxu0 %v2572_v43 }
 0x246   :  { %v2584_v48 = vpop.eup %2583  ;;  %1609 = vmatprep.subr.mxu1 %v2582_v26  ;;  %1533 = vmatpush1.msra.mxu0 %v2570_v42 }
 0x247   :  { %1610 = vmatpush1.msra.mxu1 %v2584_v48  ;;  %2315 = vmatmul.mubr.msk.f32.vlgmr.msra.gmra.mxu0 %vm1341_vm2, %v1327_v19  ;;  %v1978_v48 = vpop.permute.xlu1 %1977 }
 0x248   :  { %2317 = vmatmul.mubr.msk.f32.vlgmr.msra.gmra.mxu1 %vm1341_vm2, %v1327_v19  ;;  %1572 = vmatprep.mubr.f32.mxu0 %v2672_v28 }
 0x249   :  { %1649 = vmatprep.mubr.f32.mxu1 %v2672_v28 }
 0x24b   :  { %2316 = vmatmul.mubr.msk.f32.gmra.mxu0 %vm1341_vm2, %v1328_v22 }
 0x24c   :  { %2318 = vmatmul.mubr.msk.f32.gmra.mxu1 %vm1341_vm2, %v1328_v22  ;;  %1746 = vmatprep.mubr.f32.mxu0 %v2672_v28 }
 0x24d   :  { %1817 = vmatprep.mubr.f32.mxu1 %v2672_v28 }
 0x2c7   :  { %v1414_v49 = vpop.f32.mrf.mxu0 }
 0x2c8   :  { %v1491_v51 = vpop.f32.mrf.mxu1  ;;  %v1415_v25 = vadd.f32 %v1414_v49, %v3482_v50 }
 0x2c9   :  { %v1416_v52 = vpop.f32.mrf.mxu0  ;;  %v1492_v0 = vadd.f32 %v1491_v51, %v3482_v50 }
 0x2ca   :  { %v1417_v53 = vadd.f32 %v1416_v52, %v3482_v50  ;;  %v1493_v45 = vpop.f32.mrf.mxu1  ;;  %2585 = vtanh.f32 %v1415_v25 }
 0x2cb   :  { %v1420_v55 = vpop.f32.mrf.mxu0  ;;  %v1494_v62 = vadd.f32 %v1493_v45, %v3482_v50 }
 0x2cc   :  { %v1421_v56 = vadd.f32 %v1420_v55, %v1339_v54  ;;  %v1497_v57 = vpop.f32.mrf.mxu1  ;;  %2587 = vtanh.f32 %v1417_v53 }
 0x2cd   :  { %v1422_v58 = vpop.f32.mrf.mxu0  ;;  %v1498_v59 = vadd.f32 %v1497_v57, %v1339_v54 }
 0x2ce   :  { %v1423_v60 = vadd.f32 %v1422_v58, %v1339_v54  ;;  %v1499_v61 = vpop.f32.mrf.mxu1  ;;  %2589 = vtanh.f32 %v1421_v56 }
 0x2cf   :  { %v1500_v63 = vadd.f32 %v1499_v61, %v1339_v54 }
 0x2d0   :  { %2591 = vtanh.f32 %v1423_v60 }
 0x2d1   :  { %2593 = vtanh.f32 %v1500_v63 }
 0x2d2   :  { %2595 = vtanh.f32 %v1498_v59 }
 0x2d3   :  { %2597 = vtanh.f32 %v1494_v62 }
 0x2d4   :  { %2599 = vtanh.f32 %v1492_v0 }
 0x2d7   :  { %v2586_v1 = vpop.eup %2585 }
 0x2d9   :  { %v2588_v2 = vpop.eup %2587 }
 0x2db   :  { %v2590_v3 = vpop.eup %2589 }
 0x2dd   :  { %v2592_v4 = vpop.eup %2591 }
 0x2de   :  { %v2594_v5 = vpop.eup %2593  ;;  %1710 = vmatprep.subr.mxu0 %v2592_v4 }
 0x2df   :  { %v2596_v6 = vpop.eup %2595  ;;  %1781 = vmatprep.subr.mxu1 %v2594_v5  ;;  %1711 = vmatpush1.msra.mxu0 %v2590_v3  ;;  %v2042_v3 = vlaneseq }
 0x2e0   :  { %v2598_v8 = vpop.eup %2597  ;;  %1782 = vmatpush1.msra.mxu1 %v2596_v6  ;;  %1712 = vmatprep.subr.mxu0 %v2588_v2 }
 0x2e1   :  { %v2600_v9 = vpop.eup %2599  ;;  %1783 = vmatprep.subr.mxu1 %v2598_v8  ;;  %1713 = vmatpush1.msra.mxu0 %v2586_v1 }
 0x2e2   :  { %1784 = vmatpush1.msra.mxu1 %v2600_v9  ;;  %2319 = vmatmul.mubr.msk.f32.vlgmr.msra.gmra.mxu0 %vm1341_vm2, %v1672_v7 }
 0x2e3   :  { %2320 = vmatmul.mubr.msk.f32.vlgmr.msra.gmra.mxu1 %vm1341_vm2, %v1672_v7  ;;  %1888 = vmatprep.mubr.f32.mxu0 %v2672_v28 }
 0x2e4   :  { %1959 = vmatprep.mubr.f32.mxu1 %v2672_v28 }
 0x307   :  { %v1568_v10 = vpop.f32.mrf.mxu0 }
 0x308   :  { %v1645_v11 = vpop.f32.mrf.mxu1  ;;  %v1569_v12 = vadd.f32 %v1568_v10, %v3482_v50 }
 0x309   :  { %v1570_v13 = vpop.f32.mrf.mxu0  ;;  %v1646_v29 = vadd.f32 %v1645_v11, %v3482_v50  ;;  %v3501_v11 = vshrl.u32 %v2042_v3, 7 }
 0x30a   :  { %v1571_v14 = vadd.f32 %v1570_v13, %v3482_v50  ;;  %v1647_v15 = vpop.f32.mrf.mxu1  ;;  %2601 = vtanh.f32 %v1569_v12 }
 0x30b   :  { %v1574_v16 = vpop.f32.mrf.mxu0  ;;  %v1648_v24 = vadd.f32 %v1647_v15, %v3482_v50 }
 0x30c   :  { %v1575_v18 = vadd.f32 %v1574_v16, %v1339_v54  ;;  %v1651_v19 = vpop.f32.mrf.mxu1  ;;  %2603 = vtanh.f32 %v1571_v14  ;;  %v2044_v16 = vsub.s32 0, %v3501_v11 }
 0x30d   :  { %v1576_v20 = vpop.f32.mrf.mxu0  ;;  %v1652_v21 = vadd.f32 %v1651_v19, %v1339_v54  ;;  %v2040_v19 = vpop.permute.xlu0 %2039 }
 0x30e   :  { %v1577_v22 = vadd.f32 %v1576_v20, %v1339_v54  ;;  %v1653_v23 = vpop.f32.mrf.mxu1  ;;  %2605 = vtanh.f32 %v1575_v18 }
 0x30f   :  { %v1654_v28 = vadd.f32 %v1653_v23, %v1339_v54  ;;  %v2045_v23 = vrot.slane %v2040_v19, %v2044_v16 }
 0x310   :  { %2607 = vtanh.f32 %v1577_v22 }
 0x311   :  { %2609 = vtanh.f32 %v1654_v28 }
 0x312   :  { %2611 = vtanh.f32 %v1652_v21 }
 0x313   :  { %2613 = vtanh.f32 %v1648_v24 }
 0x314   :  { %2615 = vtanh.f32 %v1646_v29 }
 0x317   :  { %v2602_v27 = vpop.eup %2601 }
 0x319   :  { %v2604_v30 = vpop.eup %2603 }
 0x31b   :  { %v2606_v31 = vpop.eup %2605 }
 0x31d   :  { %v2608_v32 = vpop.eup %2607 }
 0x31e   :  { %v2610_v33 = vpop.eup %2609  ;;  %1852 = vmatprep.subr.mxu0 %v2608_v32 }
 0x31f   :  { %v2612_v34 = vpop.eup %2611  ;;  %1923 = vmatprep.subr.mxu1 %v2610_v33  ;;  %1853 = vmatpush1.msra.mxu0 %v2606_v31 }
 0x320   :  { %v2614_v35 = vpop.eup %2613  ;;  %1924 = vmatpush1.msra.mxu1 %v2612_v34  ;;  %1854 = vmatprep.subr.mxu0 %v2604_v30 }
 0x321   :  { %v2616_v36 = vpop.eup %2615  ;;  %1925 = vmatprep.subr.mxu1 %v2614_v35  ;;  %1855 = vmatpush1.msra.mxu0 %v2602_v27 }
 0x322   :  { %1926 = vmatpush1.msra.mxu1 %v2616_v36  ;;  %2321 = vmatmul.mubr.msk.f32.vlgmr.msra.gmra.mxu0 %vm1341_vm2, %v1672_v7 }
 0x323   :  { %2322 = vmatmul.mubr.msk.f32.vlgmr.msra.gmra.mxu1 %vm1341_vm2, %v1672_v7 }
 0x3a2   :  { %v1748_v37 = vpop.f32.mrf.mxu0 }
 0x3a3   :  { %v1819_v38 = vpop.f32.mrf.mxu1  ;;  %v1749_v44 = vadd.f32 %v1748_v37, %v1677_v41 }
 0x3a4   :  { %v1750_v39 = vpop.f32.mrf.mxu0  ;;  %v1820_v17 = vadd.f32 %v1819_v38, %v1677_v41 }
 0x3a5   :  { %v1821_v40 = vpop.f32.mrf.mxu1  ;;  %v1751_v42 = vadd.f32 %v1750_v39, %v1677_v41 }
 0x3a6   :  { %v1822_v43 = vadd.f32 %v1821_v40, %v1677_v41 }
 0x3a7   :  { %2617 = vtanh.f32 %v1751_v42 }
 0x3a8   :  { %2619 = vtanh.f32 %v1822_v43 }
 0x3a9   :  { %2621 = vtanh.f32 %v1749_v44 }
 0x3aa   :  { %2623 = vtanh.f32 %v1820_v17 }
 0x3b4   :  { %v2618_v46 = vpop.eup %2617 }
 0x3b5   :  { %v2620_v47 = vpop.eup %2619  ;;  %v1981_v50 = vmul.f32 %v2618_v46, %v1978_v48 }
 0x3b6   :  { %v2622_v26 = vpop.eup %2621  ;;  %v1983_v51 = vmul.f32 %v2620_v47, %v1978_v48 }
 0x3b7   :  { %v2624_v49 = vpop.eup %2623  ;;  %v1980_v25 = vmul.f32 %v2622_v26, %v1978_v48  ;;  %v1994_v53 = vrot.slane %v1981_v50, 4 }
 0x3b8   :  { %v1982_v52 = vmul.f32 %v2624_v49, %v1978_v48  ;;  %v2006_v45 = vrot.slane %v1983_v51, 4 }
 0x3b9   :  { %v1988_v54 = vrot.slane %v1980_v25, 4  ;;  %v1995_v56 = vadd.f32 %v1994_v53, %v1981_v50 }
 0x3ba   :  { %v2000_v55 = vrot.slane %v1982_v52, 4  ;;  %v2007_v57 = vadd.f32 %v2006_v45, %v1983_v51 }
 0x3bb   :  { %v1989_v58 = vadd.f32 %v1988_v54, %v1980_v25  ;;  %v1996_v61 = vrot.slane %v1995_v56, 2 }
 0x3bc   :  { %v2001_v59 = vadd.f32 %v2000_v55, %v1982_v52  ;;  %v2008_v0 = vrot.slane %v2007_v57, 2 }
 0x3bd   :  { %v1990_v4 = vrot.slane %v1989_v58, 2  ;;  %v1997_v9 = vadd.f32 %v1996_v61, %v1995_v56 }
 0x3be   :  { %v2002_v7 = vrot.slane %v2001_v59, 2  ;;  %v2009_v10 = vadd.f32 %v2008_v0, %v2007_v57 }
 0x3bf   :  { %v1991_v12 = vadd.f32 %v1990_v4, %v1989_v58  ;;  %v1998_v14 = vrot.slane %v1997_v9, 1 }
 0x3c0   :  { %v2003_v13 = vadd.f32 %v2002_v7, %v2001_v59  ;;  %v2010_v15 = vrot.slane %v2009_v10, 1 }
 0x3c1   :  { %v1992_v18 = vrot.slane %v1991_v12, 1  ;;  %v1999_v21 = vadd.f32 %v1998_v14, %v1997_v9  ;;  %v2673_v14 = vmov 1966171168  }
 0x3c2   :  { %v2004_v20 = vrot.slane %v2003_v13, 1  ;;  %v2011_v22 = vadd.f32 %v2010_v15, %v2009_v10  ;;  %v2099_v15 = vunpack.c.l.s4 %v2673_v14 }
 0x3c3   :  { %v1993_v24 = vadd.f32 %v1992_v18, %v1991_v12  ;;  %v2047_v31 = vadd.f32 %v2045_v23, %v1999_v21 }
 0x3c4   :  { %v2005_v29 = vadd.f32 %v2004_v20, %v2003_v13  ;;  %v2049_v34 = vadd.f32 %v2045_v23, %v2011_v22  ;;  %v2100_v21 = vunpack.c.0.s8 %v2099_v15 }
 0x3c5   :  { %v2046_v38 = vadd.f32 %v2045_v23, %v1993_v24  ;;  %v2055_v44 = vmul.f32 0.5, %v2047_v31 }
 0x3c6   :  { %v2057_v47 = vmul.f32 0.5, %v2049_v34 }
 0x3c7   :  { %v2054_v50 = vmul.f32 0.5, %v2046_v38 }
 0x3e2   :  { %v1890_v60 = vpop.f32.mrf.mxu0 }
 0x3e3   :  { %v1891_v62 = vadd.f32 %v1890_v60, %v1677_v41  ;;  %v1961_v63 = vpop.f32.mrf.mxu1 }
 0x3e4   :  { %v1962_v1 = vadd.f32 %v1961_v63, %v1677_v41  ;;  %v1892_v2 = vpop.f32.mrf.mxu0 }
 0x3e5   :  { %2625 = vtanh.f32 %v1891_v62  ;;  %v1893_v5 = vadd.f32 %v1892_v2, %v1677_v41  ;;  %v1963_v6 = vpop.f32.mrf.mxu1 }
 0x3e6   :  { %2627 = vtanh.f32 %v1962_v1  ;;  %v1964_v8 = vadd.f32 %v1963_v6, %v1677_v41  ;;  %v2048_v41 = vadd.f32 %v2045_v23, %v2005_v29 }
 0x3e7   :  { %2629 = vtanh.f32 %v1893_v5 }
 0x3e8   :  { %2631 = vtanh.f32 %v1964_v8  ;;  %v2056_v52 = vmul.f32 0.5, %v2048_v41 }
 0x3e9   :  { %2633 = vtanh.f32 %v2055_v44 }
 0x3ea   :  { %2635 = vtanh.f32 %v2057_v47 }
 0x3eb   :  { %2637 = vtanh.f32 %v2054_v50 }
 0x3ec   :  { %2639 = vtanh.f32 %v2056_v52 }
 0x3f2   :  { %v2626_v28 = vpop.eup %2625 }
 0x3f3   :  { %v2628_v27 = vpop.eup %2627  ;;  %v1984_v30 = vmul.f32 %v2626_v28, %v1978_v48 }
 0x3f4   :  { %v2630_v32 = vpop.eup %2629  ;;  %v1986_v33 = vmul.f32 %v2628_v27, %v1978_v48 }
 0x3f5   :  { %v2632_v35 = vpop.eup %2631  ;;  %v2012_v36 = vrot.slane %v1984_v30, 4  ;;  %v1985_v37 = vmul.f32 %v2630_v32, %v1978_v48  ;;  %v2103_v32 = vsub.s32 %v2100_v21, %v3501_v11 }
 0x3f6   :  { %v2024_v39 = vrot.slane %v1986_v33, 4  ;;  %v1987_v40 = vmul.f32 %v2632_v35, %v1978_v48  ;;  %v2634_v9 = vpop.eup %2633 }
 0x3f7   :  { %v2013_v42 = vadd.f32 %v2012_v36, %v1984_v30  ;;  %v2018_v43 = vrot.slane %v1985_v37, 4  ;;  %v2636_v10 = vpop.eup %2635  ;;  %v2071_v16 = vadd.f32 1.0, %v2634_v9 }
 0x3f8   :  { %v2025_v17 = vadd.f32 %v2024_v39, %v1986_v33  ;;  %v2030_v46 = vrot.slane %v1987_v40, 4  ;;  %v2638_v12 = vpop.eup %2637  ;;  %v2073_v18 = vadd.f32 1.0, %v2636_v10 }
 0x3f9   :  { %v2014_v26 = vrot.slane %v2013_v42, 2  ;;  %v2019_v49 = vadd.f32 %v2018_v43, %v1985_v37  ;;  %v2640_v13 = vpop.eup %2639  ;;  %v2070_v19 = vadd.f32 1.0, %v2638_v12  ;;  %v2079_v22 = vmul.f32 0.5, %v2071_v16 }
 0x3fa   :  { %v2026_v51 = vrot.slane %v2025_v17, 2  ;;  %v2031_v25 = vadd.f32 %v2030_v46, %v1987_v40  ;;  %v2072_v20 = vadd.f32 1.0, %v2640_v13 }
 0x3fb   :  { %v2015_v53 = vadd.f32 %v2014_v26, %v2013_v42  ;;  %v2020_v45 = vrot.slane %v2019_v49, 2  ;;  %v2078_v28 = vmul.f32 0.5, %v2070_v19 }
 0x3fc   :  { %v2027_v54 = vadd.f32 %v2026_v51, %v2025_v17  ;;  %v2032_v55 = vrot.slane %v2031_v25, 2  ;;  %v2080_v29 = vmul.f32 0.5, %v2072_v20 }
 0x3fd   :  { %v2016_v48 = vrot.slane %v2015_v53, 1  ;;  %v2021_v56 = vadd.f32 %v2020_v45, %v2019_v49  ;;  %v2094_v34 = vcombine.low %v2078_v28, %v2079_v22 }
 0x3fe   :  { %v2028_v57 = vrot.slane %v2027_v54, 1  ;;  %v2033_v58 = vadd.f32 %v2032_v55, %v2031_v25 }
 0x3ff   :  { %v2022_v59 = vrot.slane %v2021_v56, 1  ;;  %v2017_v60 = vadd.f32 %v2016_v48, %v2015_v53  ;;  %v2104_v43 = vrot.slane %v2094_v34, %v2103_v32 }
 0x400   :  { %v2034_v61 = vrot.slane %v2033_v58, 1  ;;  %v2029_v62 = vadd.f32 %v2028_v57, %v2027_v54 }
 0x401   :  { %v2023_v63 = vadd.f32 %v2022_v59, %v2021_v56  ;;  %v2050_v0 = vadd.f32 %v2045_v23, %v2017_v60 }
 0x402   :  { %v2035_v1 = vadd.f32 %v2034_v61, %v2033_v58  ;;  %v2052_v2 = vadd.f32 %v2045_v23, %v2029_v62 }
 0x403   :  { %v2051_v3 = vadd.f32 %v2045_v23, %v2023_v63  ;;  %v2058_v4 = vmul.f32 0.5, %v2050_v0 }
 0x404   :  { %v2053_v5 = vadd.f32 %v2045_v23, %v2035_v1  ;;  %v2060_v6 = vmul.f32 0.5, %v2052_v2  ;;  %v2081_v23 = vmul.f32 0.5, %v2073_v18 }
 0x405   :  { %v2059_v7 = vmul.f32 0.5, %v2051_v3  ;;  %2641 = vtanh.f32 %v2058_v4 }
 0x406   :  { %v2061_v8 = vmul.f32 0.5, %v2053_v5  ;;  %2643 = vtanh.f32 %v2060_v6  ;;  %v2095_v35 = vcombine.low %v2080_v29, %v2081_v23 }
 0x407   :  { %2645 = vtanh.f32 %v2059_v7 }
 0x408   :  { %2647 = vtanh.f32 %v2061_v8  ;;  %v2111_v44 = vrot.slane %v2095_v35, %v2103_v32 }
 0x40a   :  { %v2126_v49 = vcombine.low %v2104_v43, %v2111_v44 }
 0x40c   :  { %v2134_v11 = vrot.slane %v2126_v49, %v2103_v32 }
 0x412   :  { %v2642_v24 = vpop.eup %2641 }
 0x413   :  { %v2644_v27 = vpop.eup %2643  ;;  %v2074_v30 = vadd.f32 1.0, %v2642_v24 }
 0x414   :  { %v2646_v31 = vpop.eup %2645  ;;  %v2076_v33 = vadd.f32 1.0, %v2644_v27 }
 0x415   :  { %v2648_v36 = vpop.eup %2647  ;;  %v2075_v37 = vadd.f32 1.0, %v2646_v31  ;;  %v2082_v39 = vmul.f32 0.5, %v2074_v30 }
 0x416   :  { %v2077_v38 = vadd.f32 1.0, %v2648_v36  ;;  %v2084_v41 = vmul.f32 0.5, %v2076_v33 }
 0x417   :  { %v2083_v40 = vmul.f32 0.5, %v2075_v37 }
 0x418   :  { %v2085_v42 = vmul.f32 0.5, %v2077_v38 }
 0x419   :  { %v2096_v17 = vcombine.low %v2082_v39, %v2083_v40 }
 0x41a   :  { %v2097_v46 = vcombine.low %v2084_v41, %v2085_v42 }
 0x41b   :  { %v2118_v47 = vrot.slane %v2096_v17, %v2103_v32 }
 0x41c   :  { %v2125_v26 = vrot.slane %v2097_v46, %v2103_v32 }
 0x41e   :  { %v2127_v50 = vcombine.low %v2118_v47, %v2125_v26 }
 0x420   :  { %v2141_v51 = vrot.slane %v2127_v50, %v2103_v32 }
 0x422   :  { %v2142_v25 = vcombine.low %v2134_v11, %v2141_v51 }
 0x424   :  { %2144 = vst [vmem:[#allocation3] sm:$0xff] %v2142_v25 }
 0x425   :  { %2660 = shalt.err (!%p2657_p4)
}
 0x426   :  { %2154 = dma.vmem_to_hbm [thread:$0]  %s2152_s13, 128, %s3519_s11, [#allocation4]  }
 0x427   :  { %2669 = dma.done.wait [#allocation4], 128  }
 0x428   :  { %2670 = vsyncadd [#allocation4], 4294967168 }
 0x429   :  { %2158 = vsyncpa [#allocation4], 1 }

</bundles_post_ra>
